<compile_context>
chip_gen: v5e
topology: v5e:2x2
jax: 0.10.0
libtpu: 0.0.40
codegen_flags: <defaults>
</compile_context>

<pallas_src>
import jax
import jax.numpy as jnp
from jax.experimental import pallas as pl
from jax.experimental.pallas import tpu as pltpu


_VMEM_BUDGET_BYTES = 48 * 1024 * 1024  # fits v7x (64 MiB/TC) with headroom; << v5e/v6e 128 MiB


def _vmem_bytes(bb, S, D_in, H, D_out):
    """Rough upper bound on VMEM needed for one batch block (f32 math, bf16 weights)."""
    f32, bf16 = 4, 2
    x_blk = 2 * bb * S * D_in * f32                    # double-buffered input block
    o_blk = 2 * bb * S * D_out * f32                   # double-buffered output block
    pre = bb * S * 4 * H * f32                         # hoisted input projection (dominant)
    hist = bb * S * H * f32                            # h_t history scratch
    live = bb * (12 * H + 4 * D_out) * f32             # per-step gates / h / c / y live values
    weights = ((D_in + H) * 4 * H + H * D_out) * bf16 * 2 + (4 * H + D_out) * f32 * 2
    return x_blk + o_blk + pre + hist + live + weights


def _choose_block_b(B, S, D_in, H, D_out):
    # Legal block_b: divides B and is a multiple of 8 (sublane tile) or == B,
    # because block_b sits in the second-minor position of the x / out blocks.
    legal = [d for d in range(1, B + 1) if B % d == 0 and (d % 8 == 0 or d == B)]
    fits = [d for d in legal if _vmem_bytes(d, S, D_in, H, D_out) <= _VMEM_BUDGET_BYTES]
    if not fits:
        fits = [min(legal)]
    # Prefer >=2 grid steps (pipelining + v7x megacore) with >=8 MXU rows per step.
    split = [d for d in fits if B // d >= 2 and d >= 8]
    return max(split) if split else max(fits)


def _lstm_wrapper_kernel(x_ref, wih_ref, whh_ref, b_ref, wout_ref, bout_ref,
                         out_ref, h_hist_ref):
    S, Bb, D_in = x_ref.shape          # static block shapes (time-major)
    H = whh_ref.shape[0]
    D_out = wout_ref.shape[1]

    x = x_ref[...]                                      # (S, Bb, D_in) f32, time-major
    # ModelWrapper validity mask, computed once as bool: (x[:, :, 0] != -1).
    valid = x[:, :, 0:1] != jnp.float32(-1.0)           # (S, Bb, 1)

    # ---- Phase 1: hoisted input projection — one bf16 MXU matmul for all steps.
    x2d = x.reshape(S * Bb, D_in).astype(jnp.bfloat16)
    pre = jnp.dot(x2d, wih_ref[...], preferred_element_type=jnp.float32) + b_ref[...]
    pre = pre.reshape(S, Bb, 4 * H)                     # time-major: pre[s] is a contiguous slab

    whh = whh_ref[...]                                  # (H, 4H) bf16, VMEM-resident
    h = jnp.zeros((Bb, H), jnp.float32)
    c = jnp.zeros((Bb, H), jnp.float32)

    # ---- Phase 2: serial recurrence — only h_prev @ W_hh per step on the chain.
    # Gate column order is (i, f, o, g): one sigmoid over the 3H slice + one tanh.
    # S is small & static, so the loop is fully unrolled for the scheduler.
    for s in range(S):
        gates = pre[s] + jnp.dot(h.astype(jnp.bfloat16), whh,
                                 preferred_element_type=jnp.float32)
        sig = jax.nn.sigmoid(gates[:, :3 * H])
        i_g = sig[:, 0 * H:1 * H]
        f_g = sig[:, 1 * H:2 * H]
        o_g = sig[:, 2 * H:3 * H]
        g_g = jnp.tanh(gates[:, 3 * H:])

        c_new = f_g * c + i_g * g_g
        h_new = o_g * jnp.tanh(c_new)

        # Contiguous leading-index slab write of the (unfrozen) h_t history — the
        # head uses h_new; padded steps are zeroed by the output mask (matches ref).
        h_hist_ref[s, :, :] = h_new

        # pack_padded_sequence semantics: freeze h/c past the valid length.
        v = valid[s]                                    # (Bb, 1) bool
        c = jnp.where(v, c_new, c)
        h = jnp.where(v, h_new, h)

    # ---- Phase 3: batched output head + ModelWrapper output mask, one store.
    h_all = h_hist_ref[...].reshape(S * Bb, H).astype(jnp.bfloat16)
    y = jnp.dot(h_all, wout_ref[...], preferred_element_type=jnp.float32) + bout_ref[...]
    y = y.reshape(S, Bb, D_out)
    out_ref[...] = jnp.where(valid, y, jnp.float32(0.0)).astype(out_ref.dtype)


def model_wrapper_forward(x, params, *, block_b=None):
    """x: (B, S, D_in) float32, PyTorch layout. Returns (B, S, D_out)."""
    B, S, D_in = x.shape
    w_ih, w_hh, b, w_out, b_out = params
    H = w_hh.shape[0]
    D_out = w_out.shape[1]

    if block_b is None:
        block_b = _choose_block_b(B, S, D_in, H, D_out)
    assert B % block_b == 0 and (block_b % 8 == 0 or block_b == B), \
        "block_b must divide B and be a multiple of 8 (or equal B)"

    vmem_limit = int(min(_VMEM_BUDGET_BYTES,
                         max(2 * _vmem_bytes(block_b, S, D_in, H, D_out),
                             16 * 1024 * 1024)))

    # bf16 weights for the MXU (accumulation stays f32 via preferred_element_type);
    # biases and gate/state elementwise math stay f32 (v5e VPU has no bf16).
    w_ih_b = w_ih.astype(jnp.bfloat16)
    w_hh_b = w_hh.astype(jnp.bfloat16)
    w_out_b = w_out.astype(jnp.bfloat16)

    # Wrapper-side transpose to time-major (layout plumbing, outside the kernel):
    # per-step slabs inside the kernel become contiguous leading-index accesses.
    x_t = jnp.transpose(x, (1, 0, 2))                   # (S, B, D_in)

    out_t = pl.pallas_call(
        _lstm_wrapper_kernel,
        out_shape=jax.ShapeDtypeStruct((S, B, D_out), jnp.float32),
        grid_spec=pltpu.PrefetchScalarGridSpec(
            num_scalar_prefetch=0,
            grid=(B // block_b,),                                        # batch blocks
            in_specs=[
                pl.BlockSpec((S, block_b, D_in), lambda i: (0, i, 0)),   # x (time-major)
                pl.BlockSpec((D_in, 4 * H), lambda i: (0, 0)),           # W_ih^T (bf16, resident)
                pl.BlockSpec((H, 4 * H), lambda i: (0, 0)),              # W_hh^T (bf16, resident)
                pl.BlockSpec((1, 4 * H), lambda i: (0, 0)),              # bias (f32)
                pl.BlockSpec((H, D_out), lambda i: (0, 0)),              # W_out (bf16)
                pl.BlockSpec((1, D_out), lambda i: (0, 0)),              # b_out (f32)
            ],
            out_specs=pl.BlockSpec((S, block_b, D_out), lambda i: (0, i, 0)),
            scratch_shapes=[pltpu.VMEM((S, block_b, H), jnp.float32)],   # h_t history
        ),
        compiler_params=pltpu.CompilerParams(
            # independent batch blocks -> second TensorCore on v7x for free
            dimension_semantics=("parallel",),
            vmem_limit_bytes=vmem_limit),
    )(x_t, w_ih_b, w_hh_b, b, w_out_b, b_out)

    return jnp.transpose(out_t, (1, 0, 2))              # back to PyTorch (B, S, D_out)


def make_params(key, d_in, hidden, d_out):
    # Weights are pre-transposed ((in, out) layout) and the gate columns are in
    # (i, f, o, g) order so the kernel needs only one sigmoid + one tanh launch.
    k = jax.random.split(key, 5)
    scale = 0.1
    w_ih = scale * jax.random.normal(k[0], (d_in, 4 * hidden), jnp.float32)
    w_hh = scale * jax.random.normal(k[1], (hidden, 4 * hidden), jnp.float32)
    b = scale * jax.random.normal(k[2], (1, 4 * hidden), jnp.float32)
    w_out = scale * jax.random.normal(k[3], (hidden, d_out), jnp.float32)
    b_out = scale * jax.random.normal(k[4], (1, d_out), jnp.float32)
    return (w_ih, w_hh, b, w_out, b_out)


def _reference_forward(x, params):
    """Pure-JAX f32 reference with identical semantics (sanity check only)."""
    w_ih, w_hh, b, w_out, b_out = params
    B, S, _ = x.shape
    H = w_hh.shape[0]
    hi = jax.lax.Precision.HIGHEST
    mask = (x[:, :, 0] != -1.0)                                        # (B, S)
    pre = jnp.einsum("bsd,dg->bsg", x, w_ih, precision=hi) + b         # (B, S, 4H)

    def step(carry, t):
        h, c = carry
        gates = pre[:, t, :] + jnp.dot(h, w_hh, precision=hi)
        i = jax.nn.sigmoid(gates[:, 0 * H:1 * H])
        f = jax.nn.sigmoid(gates[:, 1 * H:2 * H])
        o = jax.nn.sigmoid(gates[:, 2 * H:3 * H])
        g = jnp.tanh(gates[:, 3 * H:4 * H])
        c_new = f * c + i * g
        h_new = o * jnp.tanh(c_new)
        m = mask[:, t][:, None]
        y_t = (jnp.dot(h_new, w_out, precision=hi) + b_out) * m
        return (jnp.where(m, h_new, h), jnp.where(m, c_new, c)), y_t

    init = (jnp.zeros((B, H), jnp.float32), jnp.zeros((B, H), jnp.float32))
    _, ys = jax.lax.scan(step, init, jnp.arange(S))
    return jnp.transpose(ys, (1, 0, 2))


if __name__ == "__main__":
    # Small but pipeline-friendly shapes: batch 16 -> block_b=8, grid=(2,).
    B, S, D_IN, HIDDEN, D_OUT = 16, 8, 4, 32, 4

    key = jax.random.PRNGKey(0)
    k_x, k_p = jax.random.split(key)

    # Padded input: padding timesteps filled with -1 (pad_sequence(padding_value=-1)).
    x = jax.random.normal(k_x, (B, S, D_IN), jnp.float32)
    valid_len = jnp.array([8, 5, 3, 8, 6, 2, 7, 4, 8, 1, 5, 8, 3, 6, 2, 7], jnp.int32)
    time_idx = jnp.arange(S)[None, :, None]                  # (1, S, 1)
    pad_mask = time_idx < valid_len[:, None, None]           # (B, S, 1) True = valid
    x = jnp.where(pad_mask, x, jnp.float32(-1.0))

    params = make_params(k_p, D_IN, HIDDEN, D_OUT)

    y = model_wrapper_forward(x, params)
    jax.block_until_ready(y)

    assert y.shape == (B, S, D_OUT)
    # Padded timesteps must be exactly zero (ModelWrapper's output mask).
    assert bool(jnp.all(jnp.where(pad_mask, 0.0, y) == 0.0))

    # Numerical sanity check vs. pure-JAX f32 reference (bf16 matmuls => loose tol).
    y_ref = _reference_forward(x, params)
    max_err = float(jnp.max(jnp.abs(y - y_ref)))
    assert max_err < 5e-2, f"kernel/reference mismatch: {max_err}"

    print("KERNEL_OK")
</pallas_src>

<mosaic_0001>
module attributes {stable_mosaic.version = 11 : i64} {
  func.func @_lstm_wrapper_kernel(%arg0: i32, %arg1: memref<8x8x4xf32, #tpu.memory_space<vmem>>, %arg2: memref<4x128xbf16, #tpu.memory_space<vmem>>, %arg3: memref<32x128xbf16, #tpu.memory_space<vmem>>, %arg4: memref<1x128xf32, #tpu.memory_space<vmem>>, %arg5: memref<32x4xbf16, #tpu.memory_space<vmem>>, %arg6: memref<1x4xf32, #tpu.memory_space<vmem>>, %arg7: memref<8x8x4xf32, #tpu.memory_space<vmem>>, %arg8: memref<8x8x32xf32, #tpu.memory_space<vmem>>) attributes {dimension_semantics = [#tpu.dimension_semantics<parallel>], iteration_bounds = array<i64: 2>, scalar_prefetch = 0 : i64, scratch_operands = 1 : i64, tpu.core_type = #tpu.core_type<tc>, window_params = [{transform_indices = @transform_0, window_bounds = array<i64: 8, 8, 4>}, {pipeline_mode = #tpu.pipeline_mode<synchronous>, transform_indices = @transform_1, window_bounds = array<i64: 4, 128>}, {pipeline_mode = #tpu.pipeline_mode<synchronous>, transform_indices = @transform_2, window_bounds = array<i64: 32, 128>}, {pipeline_mode = #tpu.pipeline_mode<synchronous>, transform_indices = @transform_3, window_bounds = array<i64: 1, 128>}, {pipeline_mode = #tpu.pipeline_mode<synchronous>, transform_indices = @transform_4, window_bounds = array<i64: 32, 4>}, {pipeline_mode = #tpu.pipeline_mode<synchronous>, transform_indices = @transform_5, window_bounds = array<i64: 1, 4>}, {transform_indices = @transform_6, window_bounds = array<i64: 8, 8, 4>}]} {
    %c0 = arith.constant 0 : index
    %c0_0 = arith.constant 0 : index
    %c0_1 = arith.constant 0 : index
    %0 = vector.load %arg1[%c0, %c0_0, %c0_1] : memref<8x8x4xf32, #tpu.memory_space<vmem>>, vector<8x8x4xf32>
    %1 = vector.extract_strided_slice %0 {offsets = [0, 0, 0], sizes = [8, 8, 1], strides = [1, 1, 1]} : vector<8x8x4xf32> to vector<8x8x1xf32>
    %cst = arith.constant -1.000000e+00 : f32
    %2 = vector.broadcast %cst : f32 to vector<8x8x1xf32>
    %3 = arith.cmpf one, %1, %2 : vector<8x8x1xf32>
    %4 = vector.shape_cast %0 : vector<8x8x4xf32> to vector<64x4xf32>
    %5 = arith.truncf %4 : vector<64x4xf32> to vector<64x4xbf16>
    %c0_2 = arith.constant 0 : index
    %c0_3 = arith.constant 0 : index
    %6 = vector.load %arg2[%c0_2, %c0_3] : memref<4x128xbf16, #tpu.memory_space<vmem>>, vector<4x128xbf16>
    %cst_4 = arith.constant dense<0.000000e+00> : vector<64x128xf32>
    %7 = tpu.matmul %5, %6, %cst_4 {dimension_numbers = #tpu.dot_dimension_numbers<[1], [0], [0], [1], [0, 0, 1, 1], [], []>} : vector<64x4xbf16>, vector<4x128xbf16>, vector<64x128xf32> -> vector<64x128xf32>
    %c0_5 = arith.constant 0 : index
    %c0_6 = arith.constant 0 : index
    %8 = vector.load %arg4[%c0_5, %c0_6] : memref<1x128xf32, #tpu.memory_space<vmem>>, vector<1x128xf32>
    %9 = vector.broadcast %8 : vector<1x128xf32> to vector<64x128xf32>
    %10 = arith.addf %7, %9 : vector<64x128xf32>
    %11 = vector.shape_cast %10 : vector<64x128xf32> to vector<8x8x128xf32>
    %c0_7 = arith.constant 0 : index
    %c0_8 = arith.constant 0 : index
    %12 = vector.load %arg3[%c0_7, %c0_8] : memref<32x128xbf16, #tpu.memory_space<vmem>>, vector<32x128xbf16>
    %cst_9 = arith.constant 0.000000e+00 : f32
    %13 = vector.broadcast %cst_9 : f32 to vector<8x32xf32>
    %cst_10 = arith.constant 0.000000e+00 : f32
    %14 = vector.broadcast %cst_10 : f32 to vector<8x32xf32>
    %15 = vector.extract_strided_slice %11 {offsets = [0, 0, 0], sizes = [1, 8, 128], strides = [1, 1, 1]} : vector<8x8x128xf32> to vector<1x8x128xf32>
    %16 = vector.shape_cast %15 : vector<1x8x128xf32> to vector<8x128xf32>
    %17 = arith.truncf %13 : vector<8x32xf32> to vector<8x32xbf16>
    %cst_11 = arith.constant dense<0.000000e+00> : vector<8x128xf32>
    %18 = tpu.matmul %17, %12, %cst_11 {dimension_numbers = #tpu.dot_dimension_numbers<[1], [0], [0], [1], [0, 0, 1, 1], [], []>} : vector<8x32xbf16>, vector<32x128xbf16>, vector<8x128xf32> -> vector<8x128xf32>
    %19 = arith.addf %16, %18 : vector<8x128xf32>
    %20 = vector.extract_strided_slice %19 {offsets = [0, 0], sizes = [8, 96], strides = [1, 1]} : vector<8x128xf32> to vector<8x96xf32>
    %21 = arith.negf %20 : vector<8x96xf32>
    %22 = math.exp %21 : vector<8x96xf32>
    %cst_12 = arith.constant 1.000000e+00 : f32
    %23 = vector.broadcast %cst_12 : f32 to vector<8x96xf32>
    %24 = arith.addf %23, %22 : vector<8x96xf32>
    %25 = arith.divf %23, %24 : vector<8x96xf32>
    %26 = vector.extract_strided_slice %25 {offsets = [0, 0], sizes = [8, 32], strides = [1, 1]} : vector<8x96xf32> to vector<8x32xf32>
    %27 = vector.extract_strided_slice %25 {offsets = [0, 32], sizes = [8, 32], strides = [1, 1]} : vector<8x96xf32> to vector<8x32xf32>
    %28 = vector.extract_strided_slice %25 {offsets = [0, 64], sizes = [8, 32], strides = [1, 1]} : vector<8x96xf32> to vector<8x32xf32>
    %29 = vector.extract_strided_slice %19 {offsets = [0, 96], sizes = [8, 32], strides = [1, 1]} : vector<8x128xf32> to vector<8x32xf32>
    %30 = math.tanh %29 : vector<8x32xf32>
    %31 = arith.mulf %27, %14 : vector<8x32xf32>
    %32 = arith.mulf %26, %30 : vector<8x32xf32>
    %33 = arith.addf %31, %32 : vector<8x32xf32>
    %34 = math.tanh %33 : vector<8x32xf32>
    %35 = arith.mulf %28, %34 : vector<8x32xf32>
    %c0_13 = arith.constant 0 : index
    %c0_14 = arith.constant 0 : index
    %c0_15 = arith.constant 0 : index
    %36 = vector.load %arg8[%c0_13, %c0_14, %c0_15] : memref<8x8x32xf32, #tpu.memory_space<vmem>>, vector<1x8x32xf32>
    %37 = vector.shape_cast %36 : vector<1x8x32xf32> to vector<8x32xf32>
    %38 = vector.shape_cast %35 : vector<8x32xf32> to vector<1x8x32xf32>
    tpu.vector_store %arg8[%c0_13, %c0_14, %c0_15], %38 {strides = array<i32>} : memref<8x8x32xf32, #tpu.memory_space<vmem>>, vector<1x8x32xf32>,
    %39 = vector.extract_strided_slice %3 {offsets = [0, 0, 0], sizes = [1, 8, 1], strides = [1, 1, 1]} : vector<8x8x1xi1> to vector<1x8x1xi1>
    %40 = vector.shape_cast %39 : vector<1x8x1xi1> to vector<8x1xi1>
    %41 = vector.shape_cast %40 : vector<8x1xi1> to vector<8x1xi1>
    %42 = vector.broadcast %41 : vector<8x1xi1> to vector<8x32xi1>
    %43 = arith.select %42, %33, %14 : vector<8x32xi1>, vector<8x32xf32>
    %44 = vector.shape_cast %40 : vector<8x1xi1> to vector<8x1xi1>
    %45 = vector.broadcast %44 : vector<8x1xi1> to vector<8x32xi1>
    %46 = arith.select %45, %35, %13 : vector<8x32xi1>, vector<8x32xf32>
    %47 = vector.extract_strided_slice %11 {offsets = [1, 0, 0], sizes = [1, 8, 128], strides = [1, 1, 1]} : vector<8x8x128xf32> to vector<1x8x128xf32>
    %48 = vector.shape_cast %47 : vector<1x8x128xf32> to vector<8x128xf32>
    %49 = arith.truncf %46 : vector<8x32xf32> to vector<8x32xbf16>
    %cst_16 = arith.constant dense<0.000000e+00> : vector<8x128xf32>
    %50 = tpu.matmul %49, %12, %cst_16 {dimension_numbers = #tpu.dot_dimension_numbers<[1], [0], [0], [1], [0, 0, 1, 1], [], []>} : vector<8x32xbf16>, vector<32x128xbf16>, vector<8x128xf32> -> vector<8x128xf32>
    %51 = arith.addf %48, %50 : vector<8x128xf32>
    %52 = vector.extract_strided_slice %51 {offsets = [0, 0], sizes = [8, 96], strides = [1, 1]} : vector<8x128xf32> to vector<8x96xf32>
    %53 = arith.negf %52 : vector<8x96xf32>
    %54 = math.exp %53 : vector<8x96xf32>
    %cst_17 = arith.constant 1.000000e+00 : f32
    %55 = vector.broadcast %cst_17 : f32 to vector<8x96xf32>
    %56 = arith.addf %55, %54 : vector<8x96xf32>
    %57 = arith.divf %55, %56 : vector<8x96xf32>
    %58 = vector.extract_strided_slice %57 {offsets = [0, 0], sizes = [8, 32], strides = [1, 1]} : vector<8x96xf32> to vector<8x32xf32>
    %59 = vector.extract_strided_slice %57 {offsets = [0, 32], sizes = [8, 32], strides = [1, 1]} : vector<8x96xf32> to vector<8x32xf32>
    %60 = vector.extract_strided_slice %57 {offsets = [0, 64], sizes = [8, 32], strides = [1, 1]} : vector<8x96xf32> to vector<8x32xf32>
    %61 = vector.extract_strided_slice %51 {offsets = [0, 96], sizes = [8, 32], strides = [1, 1]} : vector<8x128xf32> to vector<8x32xf32>
    %62 = math.tanh %61 : vector<8x32xf32>
    %63 = arith.mulf %59, %43 : vector<8x32xf32>
    %64 = arith.mulf %58, %62 : vector<8x32xf32>
    %65 = arith.addf %63, %64 : vector<8x32xf32>
    %66 = math.tanh %65 : vector<8x32xf32>
    %67 = arith.mulf %60, %66 : vector<8x32xf32>
    %c1 = arith.constant 1 : index
    %c0_18 = arith.constant 0 : index
    %c0_19 = arith.constant 0 : index
    %68 = vector.load %arg8[%c1, %c0_18, %c0_19] : memref<8x8x32xf32, #tpu.memory_space<vmem>>, vector<1x8x32xf32>
    %69 = vector.shape_cast %68 : vector<1x8x32xf32> to vector<8x32xf32>
    %70 = vector.shape_cast %67 : vector<8x32xf32> to vector<1x8x32xf32>
    tpu.vector_store %arg8[%c1, %c0_18, %c0_19], %70 {strides = array<i32>} : memref<8x8x32xf32, #tpu.memory_space<vmem>>, vector<1x8x32xf32>,
    %71 = vector.extract_strided_slice %3 {offsets = [1, 0, 0], sizes = [1, 8, 1], strides = [1, 1, 1]} : vector<8x8x1xi1> to vector<1x8x1xi1>
    %72 = vector.shape_cast %71 : vector<1x8x1xi1> to vector<8x1xi1>
    %73 = vector.shape_cast %72 : vector<8x1xi1> to vector<8x1xi1>
    %74 = vector.broadcast %73 : vector<8x1xi1> to vector<8x32xi1>
    %75 = arith.select %74, %65, %43 : vector<8x32xi1>, vector<8x32xf32>
    %76 = vector.shape_cast %72 : vector<8x1xi1> to vector<8x1xi1>
    %77 = vector.broadcast %76 : vector<8x1xi1> to vector<8x32xi1>
    %78 = arith.select %77, %67, %46 : vector<8x32xi1>, vector<8x32xf32>
    %79 = vector.extract_strided_slice %11 {offsets = [2, 0, 0], sizes = [1, 8, 128], strides = [1, 1, 1]} : vector<8x8x128xf32> to vector<1x8x128xf32>
    %80 = vector.shape_cast %79 : vector<1x8x128xf32> to vector<8x128xf32>
    %81 = arith.truncf %78 : vector<8x32xf32> to vector<8x32xbf16>
    %cst_20 = arith.constant dense<0.000000e+00> : vector<8x128xf32>
    %82 = tpu.matmul %81, %12, %cst_20 {dimension_numbers = #tpu.dot_dimension_numbers<[1], [0], [0], [1], [0, 0, 1, 1], [], []>} : vector<8x32xbf16>, vector<32x128xbf16>, vector<8x128xf32> -> vector<8x128xf32>
    %83 = arith.addf %80, %82 : vector<8x128xf32>
    %84 = vector.extract_strided_slice %83 {offsets = [0, 0], sizes = [8, 96], strides = [1, 1]} : vector<8x128xf32> to vector<8x96xf32>
    %85 = arith.negf %84 : vector<8x96xf32>
    %86 = math.exp %85 : vector<8x96xf32>
    %cst_21 = arith.constant 1.000000e+00 : f32
    %87 = vector.broadcast %cst_21 : f32 to vector<8x96xf32>
    %88 = arith.addf %87, %86 : vector<8x96xf32>
    %89 = arith.divf %87, %88 : vector<8x96xf32>
    %90 = vector.extract_strided_slice %89 {offsets = [0, 0], sizes = [8, 32], strides = [1, 1]} : vector<8x96xf32> to vector<8x32xf32>
    %91 = vector.extract_strided_slice %89 {offsets = [0, 32], sizes = [8, 32], strides = [1, 1]} : vector<8x96xf32> to vector<8x32xf32>
    %92 = vector.extract_strided_slice %89 {offsets = [0, 64], sizes = [8, 32], strides = [1, 1]} : vector<8x96xf32> to vector<8x32xf32>
    %93 = vector.extract_strided_slice %83 {offsets = [0, 96], sizes = [8, 32], strides = [1, 1]} : vector<8x128xf32> to vector<8x32xf32>
    %94 = math.tanh %93 : vector<8x32xf32>
    %95 = arith.mulf %91, %75 : vector<8x32xf32>
    %96 = arith.mulf %90, %94 : vector<8x32xf32>
    %97 = arith.addf %95, %96 : vector<8x32xf32>
    %98 = math.tanh %97 : vector<8x32xf32>
    %99 = arith.mulf %92, %98 : vector<8x32xf32>
    %c2 = arith.constant 2 : index
    %c0_22 = arith.constant 0 : index
    %c0_23 = arith.constant 0 : index
    %100 = vector.load %arg8[%c2, %c0_22, %c0_23] : memref<8x8x32xf32, #tpu.memory_space<vmem>>, vector<1x8x32xf32>
    %101 = vector.shape_cast %100 : vector<1x8x32xf32> to vector<8x32xf32>
    %102 = vector.shape_cast %99 : vector<8x32xf32> to vector<1x8x32xf32>
    tpu.vector_store %arg8[%c2, %c0_22, %c0_23], %102 {strides = array<i32>} : memref<8x8x32xf32, #tpu.memory_space<vmem>>, vector<1x8x32xf32>,
    %103 = vector.extract_strided_slice %3 {offsets = [2, 0, 0], sizes = [1, 8, 1], strides = [1, 1, 1]} : vector<8x8x1xi1> to vector<1x8x1xi1>
    %104 = vector.shape_cast %103 : vector<1x8x1xi1> to vector<8x1xi1>
    %105 = vector.shape_cast %104 : vector<8x1xi1> to vector<8x1xi1>
    %106 = vector.broadcast %105 : vector<8x1xi1> to vector<8x32xi1>
    %107 = arith.select %106, %97, %75 : vector<8x32xi1>, vector<8x32xf32>
    %108 = vector.shape_cast %104 : vector<8x1xi1> to vector<8x1xi1>
    %109 = vector.broadcast %108 : vector<8x1xi1> to vector<8x32xi1>
    %110 = arith.select %109, %99, %78 : vector<8x32xi1>, vector<8x32xf32>
    %111 = vector.extract_strided_slice %11 {offsets = [3, 0, 0], sizes = [1, 8, 128], strides = [1, 1, 1]} : vector<8x8x128xf32> to vector<1x8x128xf32>
    %112 = vector.shape_cast %111 : vector<1x8x128xf32> to vector<8x128xf32>
    %113 = arith.truncf %110 : vector<8x32xf32> to vector<8x32xbf16>
    %cst_24 = arith.constant dense<0.000000e+00> : vector<8x128xf32>
    %114 = tpu.matmul %113, %12, %cst_24 {dimension_numbers = #tpu.dot_dimension_numbers<[1], [0], [0], [1], [0, 0, 1, 1], [], []>} : vector<8x32xbf16>, vector<32x128xbf16>, vector<8x128xf32> -> vector<8x128xf32>
    %115 = arith.addf %112, %114 : vector<8x128xf32>
    %116 = vector.extract_strided_slice %115 {offsets = [0, 0], sizes = [8, 96], strides = [1, 1]} : vector<8x128xf32> to vector<8x96xf32>
    %117 = arith.negf %116 : vector<8x96xf32>
    %118 = math.exp %117 : vector<8x96xf32>
    %cst_25 = arith.constant 1.000000e+00 : f32
    %119 = vector.broadcast %cst_25 : f32 to vector<8x96xf32>
    %120 = arith.addf %119, %118 : vector<8x96xf32>
    %121 = arith.divf %119, %120 : vector<8x96xf32>
    %122 = vector.extract_strided_slice %121 {offsets = [0, 0], sizes = [8, 32], strides = [1, 1]} : vector<8x96xf32> to vector<8x32xf32>
    %123 = vector.extract_strided_slice %121 {offsets = [0, 32], sizes = [8, 32], strides = [1, 1]} : vector<8x96xf32> to vector<8x32xf32>
    %124 = vector.extract_strided_slice %121 {offsets = [0, 64], sizes = [8, 32], strides = [1, 1]} : vector<8x96xf32> to vector<8x32xf32>
    %125 = vector.extract_strided_slice %115 {offsets = [0, 96], sizes = [8, 32], strides = [1, 1]} : vector<8x128xf32> to vector<8x32xf32>
    %126 = math.tanh %125 : vector<8x32xf32>
    %127 = arith.mulf %123, %107 : vector<8x32xf32>
    %128 = arith.mulf %122, %126 : vector<8x32xf32>
    %129 = arith.addf %127, %128 : vector<8x32xf32>
    %130 = math.tanh %129 : vector<8x32xf32>
    %131 = arith.mulf %124, %130 : vector<8x32xf32>
    %c3 = arith.constant 3 : index
    %c0_26 = arith.constant 0 : index
    %c0_27 = arith.constant 0 : index
    %132 = vector.load %arg8[%c3, %c0_26, %c0_27] : memref<8x8x32xf32, #tpu.memory_space<vmem>>, vector<1x8x32xf32>
    %133 = vector.shape_cast %132 : vector<1x8x32xf32> to vector<8x32xf32>
    %134 = vector.shape_cast %131 : vector<8x32xf32> to vector<1x8x32xf32>
    tpu.vector_store %arg8[%c3, %c0_26, %c0_27], %134 {strides = array<i32>} : memref<8x8x32xf32, #tpu.memory_space<vmem>>, vector<1x8x32xf32>,
    %135 = vector.extract_strided_slice %3 {offsets = [3, 0, 0], sizes = [1, 8, 1], strides = [1, 1, 1]} : vector<8x8x1xi1> to vector<1x8x1xi1>
    %136 = vector.shape_cast %135 : vector<1x8x1xi1> to vector<8x1xi1>
    %137 = vector.shape_cast %136 : vector<8x1xi1> to vector<8x1xi1>
    %138 = vector.broadcast %137 : vector<8x1xi1> to vector<8x32xi1>
    %139 = arith.select %138, %129, %107 : vector<8x32xi1>, vector<8x32xf32>
    %140 = vector.shape_cast %136 : vector<8x1xi1> to vector<8x1xi1>
    %141 = vector.broadcast %140 : vector<8x1xi1> to vector<8x32xi1>
    %142 = arith.select %141, %131, %110 : vector<8x32xi1>, vector<8x32xf32>
    %143 = vector.extract_strided_slice %11 {offsets = [4, 0, 0], sizes = [1, 8, 128], strides = [1, 1, 1]} : vector<8x8x128xf32> to vector<1x8x128xf32>
    %144 = vector.shape_cast %143 : vector<1x8x128xf32> to vector<8x128xf32>
    %145 = arith.truncf %142 : vector<8x32xf32> to vector<8x32xbf16>
    %cst_28 = arith.constant dense<0.000000e+00> : vector<8x128xf32>
    %146 = tpu.matmul %145, %12, %cst_28 {dimension_numbers = #tpu.dot_dimension_numbers<[1], [0], [0], [1], [0, 0, 1, 1], [], []>} : vector<8x32xbf16>, vector<32x128xbf16>, vector<8x128xf32> -> vector<8x128xf32>
    %147 = arith.addf %144, %146 : vector<8x128xf32>
    %148 = vector.extract_strided_slice %147 {offsets = [0, 0], sizes = [8, 96], strides = [1, 1]} : vector<8x128xf32> to vector<8x96xf32>
    %149 = arith.negf %148 : vector<8x96xf32>
    %150 = math.exp %149 : vector<8x96xf32>
    %cst_29 = arith.constant 1.000000e+00 : f32
    %151 = vector.broadcast %cst_29 : f32 to vector<8x96xf32>
    %152 = arith.addf %151, %150 : vector<8x96xf32>
    %153 = arith.divf %151, %152 : vector<8x96xf32>
    %154 = vector.extract_strided_slice %153 {offsets = [0, 0], sizes = [8, 32], strides = [1, 1]} : vector<8x96xf32> to vector<8x32xf32>
    %155 = vector.extract_strided_slice %153 {offsets = [0, 32], sizes = [8, 32], strides = [1, 1]} : vector<8x96xf32> to vector<8x32xf32>
    %156 = vector.extract_strided_slice %153 {offsets = [0, 64], sizes = [8, 32], strides = [1, 1]} : vector<8x96xf32> to vector<8x32xf32>
    %157 = vector.extract_strided_slice %147 {offsets = [0, 96], sizes = [8, 32], strides = [1, 1]} : vector<8x128xf32> to vector<8x32xf32>
    %158 = math.tanh %157 : vector<8x32xf32>
    %159 = arith.mulf %155, %139 : vector<8x32xf32>
    %160 = arith.mulf %154, %158 : vector<8x32xf32>
    %161 = arith.addf %159, %160 : vector<8x32xf32>
    %162 = math.tanh %161 : vector<8x32xf32>
    %163 = arith.mulf %156, %162 : vector<8x32xf32>
    %c4 = arith.constant 4 : index
    %c0_30 = arith.constant 0 : index
    %c0_31 = arith.constant 0 : index
    %164 = vector.load %arg8[%c4, %c0_30, %c0_31] : memref<8x8x32xf32, #tpu.memory_space<vmem>>, vector<1x8x32xf32>
    %165 = vector.shape_cast %164 : vector<1x8x32xf32> to vector<8x32xf32>
    %166 = vector.shape_cast %163 : vector<8x32xf32> to vector<1x8x32xf32>
    tpu.vector_store %arg8[%c4, %c0_30, %c0_31], %166 {strides = array<i32>} : memref<8x8x32xf32, #tpu.memory_space<vmem>>, vector<1x8x32xf32>,
    %167 = vector.extract_strided_slice %3 {offsets = [4, 0, 0], sizes = [1, 8, 1], strides = [1, 1, 1]} : vector<8x8x1xi1> to vector<1x8x1xi1>
    %168 = vector.shape_cast %167 : vector<1x8x1xi1> to vector<8x1xi1>
    %169 = vector.shape_cast %168 : vector<8x1xi1> to vector<8x1xi1>
    %170 = vector.broadcast %169 : vector<8x1xi1> to vector<8x32xi1>
    %171 = arith.select %170, %161, %139 : vector<8x32xi1>, vector<8x32xf32>
    %172 = vector.shape_cast %168 : vector<8x1xi1> to vector<8x1xi1>
    %173 = vector.broadcast %172 : vector<8x1xi1> to vector<8x32xi1>
    %174 = arith.select %173, %163, %142 : vector<8x32xi1>, vector<8x32xf32>
    %175 = vector.extract_strided_slice %11 {offsets = [5, 0, 0], sizes = [1, 8, 128], strides = [1, 1, 1]} : vector<8x8x128xf32> to vector<1x8x128xf32>
    %176 = vector.shape_cast %175 : vector<1x8x128xf32> to vector<8x128xf32>
    %177 = arith.truncf %174 : vector<8x32xf32> to vector<8x32xbf16>
    %cst_32 = arith.constant dense<0.000000e+00> : vector<8x128xf32>
    %178 = tpu.matmul %177, %12, %cst_32 {dimension_numbers = #tpu.dot_dimension_numbers<[1], [0], [0], [1], [0, 0, 1, 1], [], []>} : vector<8x32xbf16>, vector<32x128xbf16>, vector<8x128xf32> -> vector<8x128xf32>
    %179 = arith.addf %176, %178 : vector<8x128xf32>
    %180 = vector.extract_strided_slice %179 {offsets = [0, 0], sizes = [8, 96], strides = [1, 1]} : vector<8x128xf32> to vector<8x96xf32>
    %181 = arith.negf %180 : vector<8x96xf32>
    %182 = math.exp %181 : vector<8x96xf32>
    %cst_33 = arith.constant 1.000000e+00 : f32
    %183 = vector.broadcast %cst_33 : f32 to vector<8x96xf32>
    %184 = arith.addf %183, %182 : vector<8x96xf32>
    %185 = arith.divf %183, %184 : vector<8x96xf32>
    %186 = vector.extract_strided_slice %185 {offsets = [0, 0], sizes = [8, 32], strides = [1, 1]} : vector<8x96xf32> to vector<8x32xf32>
    %187 = vector.extract_strided_slice %185 {offsets = [0, 32], sizes = [8, 32], strides = [1, 1]} : vector<8x96xf32> to vector<8x32xf32>
    %188 = vector.extract_strided_slice %185 {offsets = [0, 64], sizes = [8, 32], strides = [1, 1]} : vector<8x96xf32> to vector<8x32xf32>
    %189 = vector.extract_strided_slice %179 {offsets = [0, 96], sizes = [8, 32], strides = [1, 1]} : vector<8x128xf32> to vector<8x32xf32>
    %190 = math.tanh %189 : vector<8x32xf32>
    %191 = arith.mulf %187, %171 : vector<8x32xf32>
    %192 = arith.mulf %186, %190 : vector<8x32xf32>
    %193 = arith.addf %191, %192 : vector<8x32xf32>
    %194 = math.tanh %193 : vector<8x32xf32>
    %195 = arith.mulf %188, %194 : vector<8x32xf32>
    %c5 = arith.constant 5 : index
    %c0_34 = arith.constant 0 : index
    %c0_35 = arith.constant 0 : index
    %196 = vector.load %arg8[%c5, %c0_34, %c0_35] : memref<8x8x32xf32, #tpu.memory_space<vmem>>, vector<1x8x32xf32>
    %197 = vector.shape_cast %196 : vector<1x8x32xf32> to vector<8x32xf32>
    %198 = vector.shape_cast %195 : vector<8x32xf32> to vector<1x8x32xf32>
    tpu.vector_store %arg8[%c5, %c0_34, %c0_35], %198 {strides = array<i32>} : memref<8x8x32xf32, #tpu.memory_space<vmem>>, vector<1x8x32xf32>,
    %199 = vector.extract_strided_slice %3 {offsets = [5, 0, 0], sizes = [1, 8, 1], strides = [1, 1, 1]} : vector<8x8x1xi1> to vector<1x8x1xi1>
    %200 = vector.shape_cast %199 : vector<1x8x1xi1> to vector<8x1xi1>
    %201 = vector.shape_cast %200 : vector<8x1xi1> to vector<8x1xi1>
    %202 = vector.broadcast %201 : vector<8x1xi1> to vector<8x32xi1>
    %203 = arith.select %202, %193, %171 : vector<8x32xi1>, vector<8x32xf32>
    %204 = vector.shape_cast %200 : vector<8x1xi1> to vector<8x1xi1>
    %205 = vector.broadcast %204 : vector<8x1xi1> to vector<8x32xi1>
    %206 = arith.select %205, %195, %174 : vector<8x32xi1>, vector<8x32xf32>
    %207 = vector.extract_strided_slice %11 {offsets = [6, 0, 0], sizes = [1, 8, 128], strides = [1, 1, 1]} : vector<8x8x128xf32> to vector<1x8x128xf32>
    %208 = vector.shape_cast %207 : vector<1x8x128xf32> to vector<8x128xf32>
    %209 = arith.truncf %206 : vector<8x32xf32> to vector<8x32xbf16>
    %cst_36 = arith.constant dense<0.000000e+00> : vector<8x128xf32>
    %210 = tpu.matmul %209, %12, %cst_36 {dimension_numbers = #tpu.dot_dimension_numbers<[1], [0], [0], [1], [0, 0, 1, 1], [], []>} : vector<8x32xbf16>, vector<32x128xbf16>, vector<8x128xf32> -> vector<8x128xf32>
    %211 = arith.addf %208, %210 : vector<8x128xf32>
    %212 = vector.extract_strided_slice %211 {offsets = [0, 0], sizes = [8, 96], strides = [1, 1]} : vector<8x128xf32> to vector<8x96xf32>
    %213 = arith.negf %212 : vector<8x96xf32>
    %214 = math.exp %213 : vector<8x96xf32>
    %cst_37 = arith.constant 1.000000e+00 : f32
    %215 = vector.broadcast %cst_37 : f32 to vector<8x96xf32>
    %216 = arith.addf %215, %214 : vector<8x96xf32>
    %217 = arith.divf %215, %216 : vector<8x96xf32>
    %218 = vector.extract_strided_slice %217 {offsets = [0, 0], sizes = [8, 32], strides = [1, 1]} : vector<8x96xf32> to vector<8x32xf32>
    %219 = vector.extract_strided_slice %217 {offsets = [0, 32], sizes = [8, 32], strides = [1, 1]} : vector<8x96xf32> to vector<8x32xf32>
    %220 = vector.extract_strided_slice %217 {offsets = [0, 64], sizes = [8, 32], strides = [1, 1]} : vector<8x96xf32> to vector<8x32xf32>
    %221 = vector.extract_strided_slice %211 {offsets = [0, 96], sizes = [8, 32], strides = [1, 1]} : vector<8x128xf32> to vector<8x32xf32>
    %222 = math.tanh %221 : vector<8x32xf32>
    %223 = arith.mulf %219, %203 : vector<8x32xf32>
    %224 = arith.mulf %218, %222 : vector<8x32xf32>
    %225 = arith.addf %223, %224 : vector<8x32xf32>
    %226 = math.tanh %225 : vector<8x32xf32>
    %227 = arith.mulf %220, %226 : vector<8x32xf32>
    %c6 = arith.constant 6 : index
    %c0_38 = arith.constant 0 : index
    %c0_39 = arith.constant 0 : index
    %228 = vector.load %arg8[%c6, %c0_38, %c0_39] : memref<8x8x32xf32, #tpu.memory_space<vmem>>, vector<1x8x32xf32>
    %229 = vector.shape_cast %228 : vector<1x8x32xf32> to vector<8x32xf32>
    %230 = vector.shape_cast %227 : vector<8x32xf32> to vector<1x8x32xf32>
    tpu.vector_store %arg8[%c6, %c0_38, %c0_39], %230 {strides = array<i32>} : memref<8x8x32xf32, #tpu.memory_space<vmem>>, vector<1x8x32xf32>,
    %231 = vector.extract_strided_slice %3 {offsets = [6, 0, 0], sizes = [1, 8, 1], strides = [1, 1, 1]} : vector<8x8x1xi1> to vector<1x8x1xi1>
    %232 = vector.shape_cast %231 : vector<1x8x1xi1> to vector<8x1xi1>
    %233 = vector.shape_cast %232 : vector<8x1xi1> to vector<8x1xi1>
    %234 = vector.broadcast %233 : vector<8x1xi1> to vector<8x32xi1>
    %235 = arith.select %234, %225, %203 : vector<8x32xi1>, vector<8x32xf32>
    %236 = vector.shape_cast %232 : vector<8x1xi1> to vector<8x1xi1>
    %237 = vector.broadcast %236 : vector<8x1xi1> to vector<8x32xi1>
    %238 = arith.select %237, %227, %206 : vector<8x32xi1>, vector<8x32xf32>
    %239 = vector.extract_strided_slice %11 {offsets = [7, 0, 0], sizes = [1, 8, 128], strides = [1, 1, 1]} : vector<8x8x128xf32> to vector<1x8x128xf32>
    %240 = vector.shape_cast %239 : vector<1x8x128xf32> to vector<8x128xf32>
    %241 = arith.truncf %238 : vector<8x32xf32> to vector<8x32xbf16>
    %cst_40 = arith.constant dense<0.000000e+00> : vector<8x128xf32>
    %242 = tpu.matmul %241, %12, %cst_40 {dimension_numbers = #tpu.dot_dimension_numbers<[1], [0], [0], [1], [0, 0, 1, 1], [], []>} : vector<8x32xbf16>, vector<32x128xbf16>, vector<8x128xf32> -> vector<8x128xf32>
    %243 = arith.addf %240, %242 : vector<8x128xf32>
    %244 = vector.extract_strided_slice %243 {offsets = [0, 0], sizes = [8, 96], strides = [1, 1]} : vector<8x128xf32> to vector<8x96xf32>
    %245 = arith.negf %244 : vector<8x96xf32>
    %246 = math.exp %245 : vector<8x96xf32>
    %cst_41 = arith.constant 1.000000e+00 : f32
    %247 = vector.broadcast %cst_41 : f32 to vector<8x96xf32>
    %248 = arith.addf %247, %246 : vector<8x96xf32>
    %249 = arith.divf %247, %248 : vector<8x96xf32>
    %250 = vector.extract_strided_slice %249 {offsets = [0, 0], sizes = [8, 32], strides = [1, 1]} : vector<8x96xf32> to vector<8x32xf32>
    %251 = vector.extract_strided_slice %249 {offsets = [0, 32], sizes = [8, 32], strides = [1, 1]} : vector<8x96xf32> to vector<8x32xf32>
    %252 = vector.extract_strided_slice %249 {offsets = [0, 64], sizes = [8, 32], strides = [1, 1]} : vector<8x96xf32> to vector<8x32xf32>
    %253 = vector.extract_strided_slice %243 {offsets = [0, 96], sizes = [8, 32], strides = [1, 1]} : vector<8x128xf32> to vector<8x32xf32>
    %254 = math.tanh %253 : vector<8x32xf32>
    %255 = arith.mulf %251, %235 : vector<8x32xf32>
    %256 = arith.mulf %250, %254 : vector<8x32xf32>
    %257 = arith.addf %255, %256 : vector<8x32xf32>
    %258 = math.tanh %257 : vector<8x32xf32>
    %259 = arith.mulf %252, %258 : vector<8x32xf32>
    %c7 = arith.constant 7 : index
    %c0_42 = arith.constant 0 : index
    %c0_43 = arith.constant 0 : index
    %260 = vector.load %arg8[%c7, %c0_42, %c0_43] : memref<8x8x32xf32, #tpu.memory_space<vmem>>, vector<1x8x32xf32>
    %261 = vector.shape_cast %260 : vector<1x8x32xf32> to vector<8x32xf32>
    %262 = vector.shape_cast %259 : vector<8x32xf32> to vector<1x8x32xf32>
    tpu.vector_store %arg8[%c7, %c0_42, %c0_43], %262 {strides = array<i32>} : memref<8x8x32xf32, #tpu.memory_space<vmem>>, vector<1x8x32xf32>,
    %c0_44 = arith.constant 0 : index
    %c0_45 = arith.constant 0 : index
    %c0_46 = arith.constant 0 : index
    %263 = vector.load %arg8[%c0_44, %c0_45, %c0_46] : memref<8x8x32xf32, #tpu.memory_space<vmem>>, vector<8x8x32xf32>
    %264 = vector.shape_cast %263 : vector<8x8x32xf32> to vector<64x32xf32>
    %265 = arith.truncf %264 : vector<64x32xf32> to vector<64x32xbf16>
    %c0_47 = arith.constant 0 : index
    %c0_48 = arith.constant 0 : index
    %266 = vector.load %arg5[%c0_47, %c0_48] : memref<32x4xbf16, #tpu.memory_space<vmem>>, vector<32x4xbf16>
    %cst_49 = arith.constant dense<0.000000e+00> : vector<64x4xf32>
    %267 = tpu.matmul %265, %266, %cst_49 {dimension_numbers = #tpu.dot_dimension_numbers<[1], [0], [0], [1], [0, 0, 1, 1], [], []>} : vector<64x32xbf16>, vector<32x4xbf16>, vector<64x4xf32> -> vector<64x4xf32>
    %c0_50 = arith.constant 0 : index
    %c0_51 = arith.constant 0 : index
    %268 = vector.load %arg6[%c0_50, %c0_51] : memref<1x4xf32, #tpu.memory_space<vmem>>, vector<1x4xf32>
    %269 = vector.broadcast %268 : vector<1x4xf32> to vector<64x4xf32>
    %270 = arith.addf %267, %269 : vector<64x4xf32>
    %271 = vector.shape_cast %270 : vector<64x4xf32> to vector<8x8x4xf32>
    %cst_52 = arith.constant 0.000000e+00 : f32
    %272 = vector.shape_cast %3 : vector<8x8x1xi1> to vector<8x8x1xi1>
    %273 = vector.broadcast %272 : vector<8x8x1xi1> to vector<8x8x4xi1>
    %274 = vector.broadcast %cst_52 : f32 to vector<8x8x4xf32>
    %275 = arith.select %273, %271, %274 : vector<8x8x4xi1>, vector<8x8x4xf32>
    %c0_53 = arith.constant 0 : index
    %c0_54 = arith.constant 0 : index
    %c0_55 = arith.constant 0 : index
    %276 = vector.load %arg7[%c0_53, %c0_54, %c0_55] : memref<8x8x4xf32, #tpu.memory_space<vmem>>, vector<8x8x4xf32>
    tpu.vector_store %arg7[%c0_53, %c0_54, %c0_55], %275 {strides = array<i32>} : memref<8x8x4xf32, #tpu.memory_space<vmem>>, vector<8x8x4xf32>,
    return
  }
  func.func @transform_0(%arg0: i32) -> (i32, i32, i32) {
    %c0_i32 = arith.constant 0 : i32
    %c0_i32_0 = arith.constant 0 : i32
    %c0_i32_1 = arith.constant 0 : i32
    return %c0_i32, %arg0, %c0_i32_0 : i32, i32, i32
  }
  func.func @transform_1(%arg0: i32) -> (i32, i32) {
    %c0_i32 = arith.constant 0 : i32
    %c0_i32_0 = arith.constant 0 : i32
    %c0_i32_1 = arith.constant 0 : i32
    return %c0_i32, %c0_i32_0 : i32, i32
  }
  func.func @transform_2(%arg0: i32) -> (i32, i32) {
    %c0_i32 = arith.constant 0 : i32
    %c0_i32_0 = arith.constant 0 : i32
    %c0_i32_1 = arith.constant 0 : i32
    return %c0_i32, %c0_i32_0 : i32, i32
  }
  func.func @transform_3(%arg0: i32) -> (i32, i32) {
    %c0_i32 = arith.constant 0 : i32
    %c0_i32_0 = arith.constant 0 : i32
    %c0_i32_1 = arith.constant 0 : i32
    return %c0_i32, %c0_i32_0 : i32, i32
  }
  func.func @transform_4(%arg0: i32) -> (i32, i32) {
    %c0_i32 = arith.constant 0 : i32
    %c0_i32_0 = arith.constant 0 : i32
    %c0_i32_1 = arith.constant 0 : i32
    return %c0_i32, %c0_i32_0 : i32, i32
  }
  func.func @transform_5(%arg0: i32) -> (i32, i32) {
    %c0_i32 = arith.constant 0 : i32
    %c0_i32_0 = arith.constant 0 : i32
    %c0_i32_1 = arith.constant 0 : i32
    return %c0_i32, %c0_i32_0 : i32, i32
  }
  func.func @transform_6(%arg0: i32) -> (i32, i32, i32) {
    %c0_i32 = arith.constant 0 : i32
    %c0_i32_0 = arith.constant 0 : i32
    %c0_i32_1 = arith.constant 0 : i32
    return %c0_i32, %arg0, %c0_i32_0 : i32, i32, i32
  }
}

</mosaic_0001>

<bundles_post_ra>
// kernel: tpu_custom_call.1
= control target key start
LH: loop header
LB: loop body
LE: loop exit
PB: predicated region body
PF: predicated region fallthrough
CT: control target
= control target key end

     0   :  { %s1388_s21 = smov 0   ;;  %s1390_s22 = smov 0   ;;  %s1720_s0 = inlined_call_operand.vmem [shape: f32[8,16,4], index: 0, kind: input, shape index: {}]   ;;  %s1721_s1 = inlined_call_operand.vmem [shape: bf16[4,128], index: 1, kind: input, shape index: {}]   ;;  %s1722_s2 = inlined_call_operand.vmem [shape: bf16[32,128], index: 2, kind: input, shape index: {}]   ;;  %s1723_s3 = inlined_call_operand.vmem [shape: f32[1,128], index: 3, kind: input, shape index: {}]   ;;  %s1724_s4 = inlined_call_operand.vmem [shape: bf16[32,4], index: 4, kind: input, shape index: {}]   ;;  %s1725_s5 = inlined_call_operand.vmem [shape: f32[1,4], index: 5, kind: input, shape index: {}]   ;;  %s1726_s6 = inlined_call_operand.vmem [shape: f32[8,16,4], index: 6, kind: output, shape index: {}]  }
   0x1   :  { %s1392_s23 = smov 0  }
   0x2 LB: > { %s1174_s24 = sadd.s32 4294967295, %s1348_s23   ;;  %s1405_s25 = sadd.s32 1, %s1348_s23   ;;  %s1348_s23 = sphi %s1392_s23, %s1730_s23   ;;  %s1344_s22 = sphi %s1390_s22, %s1729_s22   ;;  %s1340_s21 = sphi %s1388_s21, %s1728_s21  }
   0x3   : > { %s20_s26 = ssub.s32 %s1348_s23, %s1405_s25  ;;  %s23_s27 = sadd.s32 1, %s1344_s22 }
   0x4   : > { %p21_p0 = scmp.eq.s32.totalorder %s20_s26, 0  ;;  %p30_p1 = scmp.ne.s32.totalorder %s1344_s22, %s1340_s21 }
   0x5   : > { %p31_p2 = scmp.eq.s32.totalorder %s1348_s23, 0  ;;  %p165_p3 = scmp.eq.s32.totalorder %s1174_s24, 1 }
   0x6   : > { %s1416_s28 = scalar_select %p21_p0, %s1344_s22, %s23_s27  }
   0x7   : > { %p32_p4 = por %p31_p2, %p30_p1  ;;  %p1418_p5 = por %p165_p3, %p30_p1 }
   0x8   : > { %p1177_p6 = scmp.ge.s32.totalorder %s1348_s23, 2 }
   0xa   : > { %202 = sbr.rel (%p1177_p6) target bundleno = 27 (0x1b), region = 36 }
   0xf   : > { %205 = sbr.rel (!%p32_p4) target bundleno = 27 (0x1b), region = 40  ;;  %s207_s30 = sand.u32 (%p32_p4), 1, %s1344_s22  }
  0x10   : > { %s1179_s7 = sshll.u32 (%p32_p4), %s1348_s23, 3  ;;  %s1178_s8 = sshll.u32 (%p32_p4), %s207_s30, 6 }
  0x11   : > { %s211_s11 = scalar_lea.vmem (%p32_p4), %s1720_s0, %s1179_s7  ;;  %s209_s12 = scalar_lea.vmem (%p32_p4), [#allocation3], %s1178_s8 }
  0x12   : > { %v254_v0 = vld [vmem:[%s211_s11] sm:$0xff] (%p32_p4)  ;;  %v256_v1 = vld [vmem:[%s211_s11 + $0x10] sm:$0xff] (%p32_p4) }
  0x13   : > { %v258_v2 = vld [vmem:[%s211_s11 + $0x20] sm:$0xff] (%p32_p4)  ;;  %255 = vst [vmem:[%s209_s12] sm:$0xff] (%p32_p4), %v254_v0  ;;  %v260_v3 = vld [vmem:[%s211_s11 + $0x30] sm:$0xff] (%p32_p4) }
  0x14   : > { %257 = vst [vmem:[%s209_s12 + $0x8] sm:$0xff] %v256_v1  ;;  %v262_v4 = vld [vmem:[%s211_s11 + $0x40] sm:$0xff]  ;;  %v264_v5 = vld [vmem:[%s211_s11 + $0x50] sm:$0xff] }
  0x15   : > { %259 = vst [vmem:[%s209_s12 + $0x10] sm:$0xff] %v258_v2  ;;  %v266_v6 = vld [vmem:[%s211_s11 + $0x60] sm:$0xff]  ;;  %v268_v7 = vld [vmem:[%s211_s11 + $0x70] sm:$0xff] }
  0x16   : > { %261 = vst [vmem:[%s209_s12 + $0x18] sm:$0xff] %v260_v3 }
  0x17   : > { %263 = vst [vmem:[%s209_s12 + $0x20] sm:$0xff] %v262_v4 }
  0x18   : > { %265 = vst [vmem:[%s209_s12 + $0x28] sm:$0xff] %v264_v5 }
  0x19   : > { %267 = vst [vmem:[%s209_s12 + $0x30] sm:$0xff] %v266_v6 }
  0x1a   : > { %269 = vst [vmem:[%s209_s12 + $0x38] sm:$0xff] %v268_v7 }
  0x1b PF: > { %p1180_p7 = scmp.ge.s32.totalorder %s1348_s23, 1  ;;  %p274_p8 = scmp.lt.s32.totalorder %s1348_s23, 3 }
  0x1d   : > { %p275_p9 = pnand %p1180_p7, %p274_p8 }
  0x1e   : > { %s281_s17 = sand.u32 (!%p275_p9), 1, %s1340_s21   ;;  %s1351_s30 = smov (!%p275_p9), 32  }
  0x1f   : > { %278 = sbr.rel (%p275_p9) target bundleno = 4882 (0x1312), region = 78  ;;  %s1439_s18 = sshll.u32 (!%p275_p9), %s281_s17, 6 }
  0x20   : > { %s1448_s26 = scalar_lea.vmem (!%p275_p9), [#allocation3], %s1439_s18  ;;  %s1352_s7 = smov (!%p275_p9), 64  }
  0x21   : > { %s1660_s14 = scalar_lea.vmem (!%p275_p9), [#allocation4], %s1439_s18 }
  0x24   : > { %v330_v8 = vld [vmem:[%s1721_s1] sm:$0x3]  ;;  %vm348_vm0 = vcmask 1041408   ;;  %v1436_v9 = vld [vmem:[%s1722_s2 + $0x8] sm:$0xff]  ;;  %vm335_vm1 = vcmask 31744   ;;  %v1350_v14 = vmov 0  }
  0x25   : > { %v350_v10 = vsel %vm348_vm0, %v330_v8, 0  ;;  %407 = vmatpush.bf16.msra.mxu1 %v1436_v9  ;;  %v1445_v11 = vld [vmem:[%s1722_s2] sm:$0xff]  ;;  %v1452_v13 = vld [vmem:[%s1448_s26 + $0x8] sm:$0xff]  ;;  %1257 = vset.pattern.permute.xlu1 %v1350_v14  ;;  %vm397_vm8 = vcmask 261120   ;;  %s1223_s15 = sshll.u32 (%p1418_p5), %s1174_s24, 3 }
  0x26   : > { %359 = vmatpush.bf16.msra.mxu0 %v350_v10  ;;  %v310_v12 = vld [vmem:[%s1448_s26] sm:$0xff]  ;;  %477 = vmatpush.bf16.msra.mxu2 %v1436_v9  ;;  %vm319_vm9 = vcmp.ne.f32.partialorder %v1452_v13, -1.0  ;;  %s1056_s18 = scalar_lea.vmem (%p1418_p5), %s1726_s6, %s1223_s15 }
  0x27   : > { %v326_v15 = vpack.c.bf16 %v1452_v13, %v310_v12  ;;  %1258 = vset.pattern.permute.xlu2 %v1350_v14  ;;  %1259 = vset.pattern.permute.xlu0 %v1350_v14  ;;  %v1472_v16 = vld [vmem:[%s1723_s3] ss:$0 sm:$0xff]  ;;  %vm318_vm6 = vcmp.ne.f32.partialorder %v310_v12, -1.0  ;;  %v528_v58 = vsel %vm319_vm9, 1, %v1350_v14 }
  0x28   : > { %v457_v42 = vsel %vm318_vm6, 1, %v1350_v14 }
  0x29   : > { %1183 = vmatmul.msk.bf16.vlgmr.msra.gmra.mxu0 %vm335_vm1, %v326_v15  ;;  %408 = vmatpush.bf16.msra.mxu1 %v1445_v11  ;;  %v312_v15 = vld [vmem:[%s1448_s26 + $0x10] sm:$0xff] }
  0x2a   : > { %478 = vmatpush.bf16.msra.mxu2 %v1445_v11  ;;  %vm320_vm15 = vcmp.ne.f32.partialorder %v312_v15, -1.0 }
  0x2c   : > { %409 = vmatmul.bf16.vlgmr.msra.gmra.mxu1 %v1350_v14 }
  0x2d   : > { %548 = vmatpush.bf16.msrb.mxu1 %v1436_v9 }
  0x2e   : > { %690 = vmatpush.bf16.msrb.mxu2 %v1436_v9 }
  0x31   : > { %549 = vmatpush.bf16.msrb.mxu1 %v1445_v11 }
  0x32   : > { %691 = vmatpush.bf16.msrb.mxu2 %v1445_v11 }
  0x35   : > { %619 = vmatpush.bf16.msra.mxu1 %v1436_v9 }
  0x39   : > { %620 = vmatpush.bf16.msra.mxu1 %v1445_v11 }
  0xa6   : > { %v361_v17 = vpop.f32.mrf.mxu0 }
  0xa7   : > { %v362_v18 = vadd.f32 %v1472_v16, %v361_v17  ;;  %v1501_v17 = vld [vmem:[%s1448_s26 + $0x18] sm:$0xff] }
  0xa8   : > { %vm321_vm6 = vcmp.ne.f32.partialorder %v1501_v17, -1.0 }
  0xa9   : > { %v410_v19 = vpop.f32.mrf.mxu1 }
  0xaa   : > { %v414_v20 = vadd.f32 %v410_v19, %v362_v18  ;;  %v327_v18 = vpack.c.bf16 %v1501_v17, %v312_v15 }
  0xac   : > { %1262 = vtanh.f32 %v414_v20  ;;  %v1195_v23 = vmul.f32 -1.442695, %v414_v20  ;;  %1184 = vmatmul.msk.bf16.gmra.mxu0 %vm335_vm1, %v327_v18 }
  0xae   : > { %1264 = vpow2.f32 %v1195_v23  ;;  %v363_v49 = vpop.f32.mrf.mxu0 }
  0xaf   : > { %v364_v50 = vadd.f32 %v1472_v16, %v363_v49 }
  0xb1   : > { %v412_v21 = vpop.f32.mrf.mxu1 }
  0xb2   : > { %v1263_v22 = vpop.eup %1262 }
  0xb3   : > { %437 = vrot.lane.b32.xlu0 %v1263_v22, %s1351_s30 }
  0xb4   : > { %v1265_v24 = vpop.eup %1264 }
  0xb5   : > { %v418_v25 = vadd.f32 1.0, %v1265_v24 }
  0xb7   : > { %1266 = vrcp.f32 %v418_v25  ;;  %v430_v31 = vand.u32 2147483648, %v418_v25  ;;  %vm424_vm3 = vweird.f32 %v418_v25  ;;  %v428_v32 = vand.u32 2147483647, %v418_v25 }
  0xb9   : > { %v431_v34 = vor.u32 1.1754944e-38, %v430_v31  ;;  %vm429_vm5 = vcmp.eq.f32.partialorder %v428_v32, 8.507059e+37  ;;  %v599_v31 = vsel %vm320_vm15, 1, %v1350_v14 }
  0xbd   : > { %v1267_v26 = vpop.eup %1266 }
  0xbe   : > { %v420_v27 = vmul.f32 %v1267_v26, %v418_v25  ;;  %vm425_vm2 = vweird.f32 %v1267_v26 }
  0xbf   : > { %vm426_vm4 = vmor %vm424_vm3, %vm425_vm2 }
  0xc0   : > { %v421_v28 = vsub.f32 1.0, %v420_v27 }
  0xc2   : > { %v422_v29 = vmul.f32 %v1267_v26, %v421_v28 }
  0xc4   : > { %v423_v30 = vadd.f32 %v1267_v26, %v422_v29 }
  0xc6   : > { %v427_v33 = vsel %vm426_vm4, %v1267_v26, %v423_v30 }
  0xc7   : > { %v432_v36 = vsel %vm429_vm5, %v431_v34, %v427_v33 }
  0xc8   : > { %v435_v38 = vmul.f32 0.0, %v432_v36 }
 0x125   : > { %v438_v35 = vpop.permute.xlu0 %437 }
 0x126   : > { %v440_v37 = vmul.f32 %v438_v35, %v432_v36 }
 0x128   : > { %442 = vrot.lane.b32.xlu0 %v440_v37, %s1351_s30 }
 0x129   : > { %v366_v25 = vpop.f32.mrf.mxu0 }
 0x12a   : > { %v367_v26 = vadd.f32 %v1472_v16, %v366_v25 }
 0x19a   : > { %v443_v39 = vpop.permute.xlu0 %442 }
 0x19b   : > { %v445_v40 = vadd.f32 %v443_v39, %v435_v38 }
 0x19d   : > { %1268 = vtanh.f32 %v445_v40 }
 0x1a3   : > { %v1269_v41 = vpop.eup %1268 }
 0x1a4   : > { %448 = vrot.lane.b32.xlu1 %v1269_v41, %s1351_s30 }
 0x1ac   : > { %459 = vperm.xlu1 %1257, %v457_v42  }
 0x216   : > { %v449_v43 = vpop.permute.xlu1 %448 }
 0x217   : > { %v1479_v44 = vmul.f32 %v449_v43, %v432_v36 }
 0x21e   : > { %v1481_v45 = vpop.permute.xlu1 %459 }
 0x21f   : > { %vm461_vm7 = vcmp.eq.s32.totalorder %v1481_v45, 1 }
 0x220   : > { %v463_v46 = vsel %vm461_vm7, %v1479_v44, 0.0  ;;  %v462_v7 = vsel %vm461_vm7, %v445_v40, 0.0 }
 0x221   : > { %v464_v47 = vpack.c.bf16 %v463_v46, %v463_v46 }
 0x223   : > { %466 = vrot.lane.b32.xlu2 %v464_v47, %s1352_s7 }
 0x27d   : > { %v467_v48 = vpop.permute.xlu2 %466 }
 0x27e   : > { %1196 = vmatmul.msk.bf16.vlgmr.msra.gmra.mxu2 %vm397_vm8, %v467_v48 }
 0x27f   : > { %761 = vmatpush.bf16.msra.mxu2 %v1436_v9 }
 0x283   : > { %762 = vmatpush.bf16.msra.mxu2 %v1445_v11 }
 0x301   : > { %v480_v51 = vpop.f32.mrf.mxu2 }
 0x302   : > { %v484_v52 = vadd.f32 %v480_v51, %v364_v50 }
 0x304   : > { %1270 = vtanh.f32 %v484_v52  ;;  %v1197_v55 = vmul.f32 -1.442695, %v484_v52 }
 0x306   : > { %1272 = vpow2.f32 %v1197_v55 }
 0x309   : > { %v482_v53 = vpop.f32.mrf.mxu2 }
 0x30a   : > { %v1271_v54 = vpop.eup %1270 }
 0x30b   : > { %507 = vrot.lane.b32.xlu2 %v1271_v54, %s1351_s30 }
 0x30c   : > { %v1273_v56 = vpop.eup %1272 }
 0x30d   : > { %v488_v57 = vadd.f32 1.0, %v1273_v56 }
 0x30f   : > { %1274 = vrcp.f32 %v488_v57  ;;  %v500_v0 = vand.u32 2147483648, %v488_v57  ;;  %vm494_vm11 = vweird.f32 %v488_v57  ;;  %v498_v1 = vand.u32 2147483647, %v488_v57 }
 0x311   : > { %v501_v3 = vor.u32 1.1754944e-38, %v500_v0  ;;  %vm499_vm13 = vcmp.eq.f32.partialorder %v498_v1, 8.507059e+37 }
 0x313   : > { %530 = vperm.xlu2 %1258, %v528_v58  }
 0x315   : > { %v1275_v59 = vpop.eup %1274 }
 0x316   : > { %v490_v60 = vmul.f32 %v1275_v59, %v488_v57  ;;  %vm495_vm10 = vweird.f32 %v1275_v59 }
 0x317   : > { %vm496_vm12 = vmor %vm494_vm11, %vm495_vm10 }
 0x318   : > { %v491_v61 = vsub.f32 1.0, %v490_v60  ;;  %v368_v60 = vpop.f32.mrf.mxu0 }
 0x31a   : > { %v492_v62 = vmul.f32 %v1275_v59, %v491_v61  ;;  %v369_v61 = vadd.f32 %v1472_v16, %v368_v60 }
 0x31c   : > { %v493_v63 = vadd.f32 %v1275_v59, %v492_v62 }
 0x31e   : > { %v497_v2 = vsel %vm496_vm12, %v1275_v59, %v493_v63 }
 0x31f   : > { %v502_v5 = vsel %vm499_vm13, %v501_v3, %v497_v2 }
 0x320   : > { %v505_v8 = vmul.f32 %v502_v5, %v462_v7 }
 0x365   : > { %v508_v4 = vpop.permute.xlu2 %507 }
 0x366   : > { %v510_v6 = vmul.f32 %v508_v4, %v502_v5 }
 0x368   : > { %512 = vrot.lane.b32.xlu0 %v510_v6, %s1351_s30  ;;  %v314_v6 = vld [vmem:[%s1448_s26 + $0x20] sm:$0xff] }
 0x369   : > { %vm322_vm9 = vcmp.ne.f32.partialorder %v314_v6, -1.0 }
 0x36d   : > { %v1505_v19 = vpop.permute.xlu2 %530 }
 0x36e   : > { %vm532_vm14 = vcmp.eq.s32.totalorder %v1505_v19, 1 }
 0x3da   : > { %v513_v10 = vpop.permute.xlu0 %512 }
 0x3db   : > { %v515_v12 = vadd.f32 %v513_v10, %v505_v8 }
 0x3dd   : > { %1276 = vtanh.f32 %v515_v12  ;;  %v533_v49 = vsel %vm532_vm14, %v515_v12, %v462_v7  ;;  %v741_v7 = vsel %vm322_vm9, 1, %v1350_v14 }
 0x3e3   : > { %v1277_v13 = vpop.eup %1276 }
 0x3e4   : > { %518 = vrot.lane.b32.xlu1 %v1277_v13, %s1351_s30 }
 0x456   : > { %v519_v20 = vpop.permute.xlu1 %518 }
 0x457   : > { %v1507_v21 = vmul.f32 %v519_v20, %v502_v5  ;;  %v670_v5 = vsel %vm321_vm6, 1, %v1350_v14 }
 0x459   : > { %v534_v22 = vsel %vm532_vm14, %v1507_v21, %v463_v46 }
 0x45a   : > { %v535_v23 = vpack.c.bf16 %v534_v22, %v534_v22 }
 0x45c   : > { %537 = vrot.lane.b32.xlu0 %v535_v23, %s1352_s7 }
 0x4ce   : > { %v538_v24 = vpop.permute.xlu0 %537 }
 0x4cf   : > { %1198 = vmatmul.msk.bf16.vlgmr.msrb.gmra.mxu1 %vm397_vm8, %v538_v24 }
 0x4d0   : > { %832 = vmatpush.bf16.msrb.mxu1 %v1436_v9 }
 0x4d4   : > { %833 = vmatpush.bf16.msrb.mxu1 %v1445_v11 }
 0x54c   : > { %v551_v27 = vpop.f32.mrf.mxu1 }
 0x54d   : > { %v555_v28 = vadd.f32 %v551_v27, %v367_v26 }
 0x54f   : > { %1278 = vtanh.f32 %v555_v28  ;;  %v1199_v32 = vmul.f32 -1.442695, %v555_v28 }
 0x551   : > { %1280 = vpow2.f32 %v1199_v32 }
 0x554   : > { %v553_v29 = vpop.f32.mrf.mxu1 }
 0x555   : > { %v1279_v30 = vpop.eup %1278 }
 0x556   : > { %578 = vrot.lane.b32.xlu1 %v1279_v30, %s1351_s30 }
 0x557   : > { %v1281_v33 = vpop.eup %1280 }
 0x558   : > { %v559_v34 = vadd.f32 1.0, %v1281_v33 }
 0x55a   : > { %1282 = vrcp.f32 %v559_v34  ;;  %v571_v40 = vand.u32 2147483648, %v559_v34  ;;  %vm565_vm2 = vweird.f32 %v559_v34  ;;  %v569_v41 = vand.u32 2147483647, %v559_v34 }
 0x55c   : > { %v572_v43 = vor.u32 1.1754944e-38, %v571_v40  ;;  %vm570_vm4 = vcmp.eq.f32.partialorder %v569_v41, 8.507059e+37 }
 0x55e   : > { %601 = vperm.xlu1 %1257, %v599_v31   ;;  %v1545_v31 = vld [vmem:[%s1448_s26 + $0x28] sm:$0xff] }
 0x55f   : > { %v328_v32 = vpack.c.bf16 %v1545_v31, %v314_v6  ;;  %vm323_vm9 = vcmp.ne.f32.partialorder %v1545_v31, -1.0 }
 0x560   : > { %v1283_v35 = vpop.eup %1282 }
 0x561   : > { %v561_v36 = vmul.f32 %v1283_v35, %v559_v34  ;;  %vm566_vm0 = vweird.f32 %v1283_v35  ;;  %1185 = vmatmul.msk.bf16.gmra.mxu0 %vm335_vm1, %v328_v32 }
 0x562   : > { %vm567_vm3 = vmor %vm565_vm2, %vm566_vm0 }
 0x563   : > { %v562_v37 = vsub.f32 1.0, %v561_v36 }
 0x565   : > { %v563_v38 = vmul.f32 %v1283_v35, %v562_v37 }
 0x567   : > { %v564_v39 = vadd.f32 %v1283_v35, %v563_v38 }
 0x569   : > { %v568_v42 = vsel %vm567_vm3, %v1283_v35, %v564_v39 }
 0x56a   : > { %v573_v47 = vsel %vm570_vm4, %v572_v43, %v568_v42 }
 0x56b   : > { %v576_v50 = vmul.f32 %v573_v47, %v533_v49 }
 0x5c8   : > { %v579_v46 = vpop.permute.xlu1 %578 }
 0x5c9   : > { %v581_v48 = vmul.f32 %v579_v46, %v573_v47 }
 0x5cb   : > { %583 = vrot.lane.b32.xlu2 %v581_v48, %s1351_s30 }
 0x5d0   : > { %v1524_v54 = vpop.permute.xlu1 %601 }
 0x5d1   : > { %vm603_vm5 = vcmp.eq.s32.totalorder %v1524_v54, 1 }
 0x5de   : > { %v371_v39 = vpop.f32.mrf.mxu0 }
 0x5df   : > { %v372_v40 = vadd.f32 %v1472_v16, %v371_v39 }
 0x625   : > { %v584_v51 = vpop.permute.xlu2 %583 }
 0x626   : > { %v586_v52 = vadd.f32 %v584_v51, %v576_v50 }
 0x628   : > { %1284 = vtanh.f32 %v586_v52  ;;  %v604_v26 = vsel %vm603_vm5, %v586_v52, %v533_v49 }
 0x62e   : > { %v1285_v53 = vpop.eup %1284 }
 0x62f   : > { %589 = vrot.lane.b32.xlu0 %v1285_v53, %s1351_s30 }
 0x6a1   : > { %v590_v55 = vpop.permute.xlu0 %589 }
 0x6a2   : > { %v1526_v56 = vmul.f32 %v590_v55, %v573_v47 }
 0x6a4   : > { %v605_v57 = vsel %vm603_vm5, %v1526_v56, %v534_v22 }
 0x6a5   : > { %v606_v58 = vpack.c.bf16 %v605_v57, %v605_v57 }
 0x6a7   : > { %608 = vrot.lane.b32.xlu2 %v606_v58, %s1352_s7 }
 0x701   : > { %v609_v59 = vpop.permute.xlu2 %608 }
 0x702   : > { %1200 = vmatmul.msk.bf16.vlgmr.msra.gmra.mxu1 %vm397_vm8, %v609_v59 }
 0x77f   : > { %v622_v62 = vpop.f32.mrf.mxu1 }
 0x780   : > { %v626_v63 = vadd.f32 %v622_v62, %v369_v61 }
 0x782   : > { %1286 = vtanh.f32 %v626_v63  ;;  %v1201_v2 = vmul.f32 -1.442695, %v626_v63 }
 0x784   : > { %1288 = vpow2.f32 %v1201_v2 }
 0x787   : > { %v624_v0 = vpop.f32.mrf.mxu1 }
 0x788   : > { %v1287_v1 = vpop.eup %1286 }
 0x789   : > { %649 = vrot.lane.b32.xlu0 %v1287_v1, %s1351_s30 }
 0x78a   : > { %v1289_v3 = vpop.eup %1288 }
 0x78b   : > { %v630_v4 = vadd.f32 1.0, %v1289_v3 }
 0x78d   : > { %1290 = vrcp.f32 %v630_v4  ;;  %v642_v18 = vand.u32 2147483648, %v630_v4  ;;  %vm636_vm11 = vweird.f32 %v630_v4  ;;  %v640_v20 = vand.u32 2147483647, %v630_v4 }
 0x78f   : > { %v643_v22 = vor.u32 1.1754944e-38, %v642_v18  ;;  %vm641_vm13 = vcmp.eq.f32.partialorder %v640_v20, 8.507059e+37 }
 0x791   : > { %672 = vperm.xlu0 %1259, %v670_v5  }
 0x793   : > { %v1291_v8 = vpop.eup %1290 }
 0x794   : > { %v632_v10 = vmul.f32 %v1291_v8, %v630_v4  ;;  %vm637_vm10 = vweird.f32 %v1291_v8 }
 0x795   : > { %vm638_vm12 = vmor %vm636_vm11, %vm637_vm10 }
 0x796   : > { %v633_v12 = vsub.f32 1.0, %v632_v10  ;;  %v373_v10 = vpop.f32.mrf.mxu0 }
 0x798   : > { %v634_v13 = vmul.f32 %v1291_v8, %v633_v12  ;;  %v374_v12 = vadd.f32 %v1472_v16, %v373_v10 }
 0x799   : > { %743 = vperm.xlu0 %1259, %v741_v7  }
 0x79a   : > { %v635_v15 = vadd.f32 %v1291_v8, %v634_v13 }
 0x79c   : > { %v639_v17 = vsel %vm638_vm12, %v1291_v8, %v635_v15 }
 0x79d   : > { %v644_v24 = vsel %vm641_vm13, %v643_v22, %v639_v17  ;;  %v812_v17 = vsel %vm323_vm9, 1, %v1350_v14 }
 0x79e   : > { %v647_v27 = vmul.f32 %v644_v24, %v604_v26 }
 0x7fb   : > { %v650_v23 = vpop.permute.xlu0 %649 }
 0x7fc   : > { %v652_v25 = vmul.f32 %v650_v23, %v644_v24 }
 0x7fe   : > { %654 = vrot.lane.b32.xlu1 %v652_v25, %s1351_s30 }
 0x803   : > { %v1549_v33 = vpop.permute.xlu0 %672 }
 0x804   : > { %vm674_vm15 = vcmp.eq.s32.totalorder %v1549_v33, 1 }
 0x80b   : > { %v1567_v3 = vpop.permute.xlu0 %743 }
 0x80c   : > { %vm745_vm6 = vcmp.eq.s32.totalorder %v1567_v3, 1 }
 0x870   : > { %v655_v28 = vpop.permute.xlu1 %654 }
 0x871   : > { %v657_v29 = vadd.f32 %v655_v28, %v647_v27 }
 0x873   : > { %1292 = vtanh.f32 %v657_v29  ;;  %v675_v62 = vsel %vm674_vm15, %v657_v29, %v604_v26 }
 0x879   : > { %v1293_v30 = vpop.eup %1292 }
 0x87a   : > { %660 = vrot.lane.b32.xlu2 %v1293_v30, %s1351_s30 }
 0x8d4   : > { %v661_v34 = vpop.permute.xlu2 %660 }
 0x8d5   : > { %v1551_v35 = vmul.f32 %v661_v34, %v644_v24 }
 0x8d7   : > { %v676_v36 = vsel %vm674_vm15, %v1551_v35, %v605_v57 }
 0x8d8   : > { %v677_v37 = vpack.c.bf16 %v676_v36, %v676_v36 }
 0x8da   : > { %679 = vrot.lane.b32.xlu1 %v677_v37, %s1352_s7 }
 0x94c   : > { %v680_v38 = vpop.permute.xlu1 %679 }
 0x94d   : > { %1202 = vmatmul.msk.bf16.vlgmr.msrb.gmra.mxu2 %vm397_vm8, %v680_v38 }
 0x94e   : > { %903 = vmatpush.bf16.msrb.mxu2 %v1436_v9 }
 0x952   : > { %904 = vmatpush.bf16.msrb.mxu2 %v1445_v11 }
 0x9d0   : > { %v693_v41 = vpop.f32.mrf.mxu2 }
 0x9d1   : > { %v697_v42 = vadd.f32 %v693_v41, %v372_v40 }
 0x9d3   : > { %1294 = vtanh.f32 %v697_v42  ;;  %v1203_v47 = vmul.f32 -1.442695, %v697_v42 }
 0x9d5   : > { %1296 = vpow2.f32 %v1203_v47  ;;  %v1587_v47 = vld [vmem:[%s1448_s26 + $0x38] sm:$0xff] }
 0x9d8   : > { %v695_v43 = vpop.f32.mrf.mxu2 }
 0x9d9   : > { %v1295_v46 = vpop.eup %1294 }
 0x9da   : > { %720 = vrot.lane.b32.xlu2 %v1295_v46, %s1351_s30  ;;  %v316_v46 = vld [vmem:[%s1448_s26 + $0x30] sm:$0xff] }
 0x9db   : > { %v1297_v48 = vpop.eup %1296 }
 0x9dc   : > { %v701_v49 = vadd.f32 1.0, %v1297_v48  ;;  %v329_v48 = vpack.c.bf16 %v1587_v47, %v316_v46 }
 0x9de   : > { %1298 = vrcp.f32 %v701_v49  ;;  %v713_v53 = vand.u32 2147483648, %v701_v49  ;;  %vm707_vm2 = vweird.f32 %v701_v49  ;;  %v711_v55 = vand.u32 2147483647, %v701_v49  ;;  %1186 = vmatmul.msk.bf16.gmra.mxu0 %vm335_vm1, %v329_v48 }
 0x9e0   : > { %v714_v58 = vor.u32 1.1754944e-38, %v713_v53  ;;  %vm712_vm4 = vcmp.eq.f32.partialorder %v711_v55, 8.507059e+37 }
 0x9e4   : > { %v1299_v50 = vpop.eup %1298 }
 0x9e5   : > { %v703_v51 = vmul.f32 %v1299_v50, %v701_v49  ;;  %vm708_vm0 = vweird.f32 %v1299_v50 }
 0x9e6   : > { %vm709_vm3 = vmor %vm707_vm2, %vm708_vm0  ;;  %vm324_vm2 = vcmp.ne.f32.partialorder %v316_v46, -1.0 }
 0x9e7   : > { %v704_v9 = vsub.f32 1.0, %v703_v51 }
 0x9e9   : > { %v705_v52 = vmul.f32 %v1299_v50, %v704_v9 }
 0x9eb   : > { %v706_v11 = vadd.f32 %v1299_v50, %v705_v52 }
 0x9ed   : > { %v710_v57 = vsel %vm709_vm3, %v1299_v50, %v706_v11 }
 0x9ee   : > { %v715_v60 = vsel %vm712_vm4, %v714_v58, %v710_v57 }
 0x9ef   : > { %v718_v63 = vmul.f32 %v715_v60, %v675_v62 }
 0xa34   : > { %v721_v59 = vpop.permute.xlu2 %720 }
 0xa35   : > { %v723_v61 = vmul.f32 %v721_v59, %v715_v60 }
 0xa37   : > { %725 = vrot.lane.b32.xlu1 %v723_v61, %s1351_s30  ;;  %v883_v61 = vsel %vm324_vm2, 1, %v1350_v14 }
 0xa5b   : > { %v376_v53 = vpop.f32.mrf.mxu0 }
 0xa5c   : > { %v377_v55 = vadd.f32 %v1472_v16, %v376_v53 }
 0xaa9   : > { %v726_v0 = vpop.permute.xlu1 %725 }
 0xaaa   : > { %v728_v1 = vadd.f32 %v726_v0, %v718_v63 }
 0xaac   : > { %1300 = vtanh.f32 %v728_v1  ;;  %v746_v39 = vsel %vm745_vm6, %v728_v1, %v675_v62 }
 0xab2   : > { %v1301_v2 = vpop.eup %1300 }
 0xab3   : > { %731 = vrot.lane.b32.xlu2 %v1301_v2, %s1351_s30 }
 0xb0d   : > { %v732_v4 = vpop.permute.xlu2 %731 }
 0xb0e   : > { %v1569_v5 = vmul.f32 %v732_v4, %v715_v60 }
 0xb10   : > { %v747_v6 = vsel %vm745_vm6, %v1569_v5, %v676_v36 }
 0xb11   : > { %v748_v7 = vpack.c.bf16 %v747_v6, %v747_v6 }
 0xb13   : > { %750 = vrot.lane.b32.xlu1 %v748_v7, %s1352_s7 }
 0xb85   : > { %v751_v8 = vpop.permute.xlu1 %750 }
 0xb86   : > { %1204 = vmatmul.msk.bf16.vlgmr.msra.gmra.mxu2 %vm397_vm8, %v751_v8 }
 0xc09   : > { %v764_v13 = vpop.f32.mrf.mxu2 }
 0xc0a   : > { %v768_v15 = vadd.f32 %v764_v13, %v374_v12 }
 0xc0c   : > { %1302 = vtanh.f32 %v768_v15  ;;  %v1205_v22 = vmul.f32 -1.442695, %v768_v15 }
 0xc0e   : > { %1304 = vpow2.f32 %v1205_v22 }
 0xc11   : > { %v766_v18 = vpop.f32.mrf.mxu2 }
 0xc12   : > { %v1303_v20 = vpop.eup %1302 }
 0xc13   : > { %791 = vrot.lane.b32.xlu2 %v1303_v20, %s1351_s30 }
 0xc14   : > { %v1305_v23 = vpop.eup %1304 }
 0xc15   : > { %v772_v24 = vadd.f32 1.0, %v1305_v23 }
 0xc17   : > { %1306 = vrcp.f32 %v772_v24  ;;  %v784_v30 = vand.u32 2147483648, %v772_v24  ;;  %vm778_vm11 = vweird.f32 %v772_v24  ;;  %v782_v32 = vand.u32 2147483647, %v772_v24 }
 0xc19   : > { %v785_v34 = vor.u32 1.1754944e-38, %v784_v30  ;;  %vm783_vm13 = vcmp.eq.f32.partialorder %v782_v32, 8.507059e+37 }
 0xc1b   : > { %814 = vperm.xlu2 %1258, %v812_v17  }
 0xc1d   : > { %v1307_v25 = vpop.eup %1306 }
 0xc1e   : > { %v774_v26 = vmul.f32 %v1307_v25, %v772_v24  ;;  %vm779_vm10 = vweird.f32 %v1307_v25 }
 0xc1f   : > { %vm780_vm12 = vmor %vm778_vm11, %vm779_vm10 }
 0xc20   : > { %v775_v27 = vsub.f32 1.0, %v774_v26 }
 0xc22   : > { %v776_v28 = vmul.f32 %v1307_v25, %v775_v27 }
 0xc24   : > { %v777_v29 = vadd.f32 %v1307_v25, %v776_v28 }
 0xc26   : > { %v781_v31 = vsel %vm780_vm12, %v1307_v25, %v777_v29  ;;  %vm325_vm12 = vcmp.ne.f32.partialorder %v1587_v47, -1.0 }
 0xc27   : > { %v786_v37 = vsel %vm783_vm13, %v785_v34, %v781_v31  ;;  %v1027_v32 = vsel %vm325_vm12, 1, %v1350_v14 }
 0xc28   : > { %v789_v40 = vmul.f32 %v786_v37, %v746_v39 }
 0xc6d   : > { %v792_v36 = vpop.permute.xlu2 %791 }
 0xc6e   : > { %v794_v38 = vmul.f32 %v792_v36, %v786_v37 }
 0xc70   : > { %796 = vrot.lane.b32.xlu0 %v794_v38, %s1351_s30 }
 0xc75   : > { %v1591_v49 = vpop.permute.xlu2 %814 }
 0xc76   : > { %vm816_vm0 = vcmp.eq.s32.totalorder %v1591_v49, 1 }
 0xce2   : > { %v797_v41 = vpop.permute.xlu0 %796 }
 0xce3   : > { %v799_v42 = vadd.f32 %v797_v41, %v789_v40 }
 0xce5   : > { %1308 = vtanh.f32 %v799_v42  ;;  %v1604_v17 = vsel %vm816_vm0, %v799_v42, %v746_v39 }
 0xceb   : > { %v1309_v43 = vpop.eup %1308 }
 0xcec   : > { %802 = vrot.lane.b32.xlu1 %v1309_v43, %s1351_s30 }
 0xd5e   : > { %v803_v50 = vpop.permute.xlu1 %802 }
 0xd5f   : > { %v805_v51 = vmul.f32 %v803_v50, %v786_v37 }
 0xd61   : > { %v818_v9 = vsel %vm816_vm0, %v805_v51, %v747_v6 }
 0xd62   : > { %v819_v52 = vpack.c.bf16 %v818_v9, %v818_v9 }
 0xd64   : > { %821 = vrot.lane.b32.xlu0 %v819_v52, %s1352_s7 }
 0xdd6   : > { %v822_v11 = vpop.permute.xlu0 %821 }
 0xdd7   : > { %1206 = vmatmul.msk.bf16.vlgmr.msrb.gmra.mxu1 %vm397_vm8, %v822_v11 }
 0xe54   : > { %v835_v57 = vpop.f32.mrf.mxu1 }
 0xe55   : > { %v839_v58 = vadd.f32 %v835_v57, %v377_v55 }
 0xe57   : > { %1310 = vtanh.f32 %v839_v58  ;;  %v1207_v62 = vmul.f32 -1.442695, %v839_v58 }
 0xe59   : > { %1312 = vpow2.f32 %v1207_v62 }
 0xe5c   : > { %v837_v59 = vpop.f32.mrf.mxu1 }
 0xe5d   : > { %v1311_v60 = vpop.eup %1310 }
 0xe5e   : > { %862 = vrot.lane.b32.xlu1 %v1311_v60, %s1351_s30 }
 0xe5f   : > { %v1313_v63 = vpop.eup %1312 }
 0xe60   : > { %v843_v0 = vadd.f32 1.0, %v1313_v63 }
 0xe62   : > { %1314 = vrcp.f32 %v843_v0  ;;  %v855_v8 = vand.u32 2147483648, %v843_v0  ;;  %vm849_vm4 = vweird.f32 %v843_v0  ;;  %v853_v10 = vand.u32 2147483647, %v843_v0 }
 0xe64   : > { %v856_v13 = vor.u32 1.1754944e-38, %v855_v8  ;;  %vm854_vm10 = vcmp.eq.f32.partialorder %v853_v10, 8.507059e+37 }
 0xe66   : > { %885 = vperm.xlu1 %1257, %v883_v61  }
 0xe68   : > { %v1315_v1 = vpop.eup %1314 }
 0xe69   : > { %v845_v2 = vmul.f32 %v1315_v1, %v843_v0  ;;  %vm850_vm3 = vweird.f32 %v1315_v1 }
 0xe6a   : > { %vm851_vm9 = vmor %vm849_vm4, %vm850_vm3 }
 0xe6b   : > { %v846_v4 = vsub.f32 1.0, %v845_v2 }
 0xe6d   : > { %v847_v6 = vmul.f32 %v1315_v1, %v846_v4 }
 0xe6f   : > { %v848_v7 = vadd.f32 %v1315_v1, %v847_v6 }
 0xe71   : > { %v852_v12 = vsel %vm851_vm9, %v1315_v1, %v848_v7 }
 0xe72   : > { %v857_v18 = vsel %vm854_vm10, %v856_v13, %v852_v12  ;;  %v1261_v12 = vld [vmem:[%s1725_s5] ss:$0 sm:$0xff] }
 0xe73   : > { %v860_v22 = vmul.f32 %v857_v18, %v1604_v17 }
 0xed0   : > { %v863_v15 = vpop.permute.xlu1 %862 }
 0xed1   : > { %v865_v20 = vmul.f32 %v863_v15, %v857_v18 }
 0xed3   : > { %867 = vrot.lane.b32.xlu2 %v865_v20, %s1351_s30 }
 0xed8   : > { %v1611_v26 = vpop.permute.xlu1 %885 }
 0xed9   : > { %vm887_vm11 = vcmp.eq.s32.totalorder %v1611_v26, 1 }
 0xf2d   : > { %v868_v23 = vpop.permute.xlu2 %867 }
 0xf2e   : > { %v1607_v24 = vadd.f32 %v868_v23, %v860_v22 }
 0xf30   : > { %1316 = vtanh.f32 %v1607_v24  ;;  %v888_v4 = vsel %vm887_vm11, %v1607_v24, %v1604_v17 }
 0xf36   : > { %v1317_v25 = vpop.eup %1316 }
 0xf37   : > { %873 = vrot.lane.b32.xlu0 %v1317_v25, %s1351_s30 }
 0xfa9   : > { %v874_v27 = vpop.permute.xlu0 %873 }
 0xfaa   : > { %v876_v28 = vmul.f32 %v874_v27, %v857_v18 }
 0xfac   : > { %v889_v29 = vsel %vm887_vm11, %v876_v28, %v818_v9 }
 0xfad   : > { %v890_v30 = vpack.c.bf16 %v889_v29, %v889_v29 }
 0xfaf   : > { %892 = vrot.lane.b32.xlu2 %v890_v30, %s1352_s7 }
 0xfb7   : > { %453 = vrot.lane.b32.xlu2 %v1479_v44, %s1352_s7 }
 0xfbf   : > { %594 = vrot.lane.b32.xlu2 %v1526_v56, %s1352_s7  ;;  %v378_v56 = vpop.f32.mrf.mxu0 }
 0xfc0   : > { %v379_v37 = vadd.f32 %v1472_v16, %v378_v56  ;;  %v1229_v16 = vld [vmem:[%s1724_s4 + $0x8] sm:$0xff] }
 0xfc1   : > { %1004 = vmatpush.bf16.msra.mxu3 %v1229_v16 }
 0xfc7   : > { %807 = vrot.lane.b32.xlu2 %v805_v51, %s1352_s7 }
 0xfcf   : > { %1029 = vperm.xlu2 %1258, %v1027_v32  }
0x1009   : > { %v893_v31 = vpop.permute.xlu2 %892 }
0x100a   : > { %1208 = vmatmul.msk.bf16.vlgmr.msrb.gmra.mxu2 %vm397_vm8, %v893_v31 }
0x1011   : > { %v454_v34 = vpop.permute.xlu2 %453 }
0x1012   : > { %456 = vst.msk [vmem:[#allocation2] sm:$0xff] %vm397_vm8, %v454_v34 }
0x1019   : > { %v595_v36 = vpop.permute.xlu2 %594  ;;  %v954_v60 = vld [vmem:[#allocation2] sm:$0xff] }
0x101a   : > { %598 = vst.msk [vmem:[#allocation2 + $0x10] sm:$0xff] %vm397_vm8, %v595_v36 }
0x1021   : > { %v808_v44 = vpop.permute.xlu2 %807  ;;  %v956_v1 = vld [vmem:[#allocation2 + $0x10] sm:$0xff] }
0x1022   : > { %811 = vst.msk [vmem:[#allocation2 + $0x28] sm:$0xff] %vm397_vm8, %v808_v44 }
0x1029   : > { %v959_v54 = vld [vmem:[#allocation2 + $0x28] sm:$0xff] }
0x108d   : > { %v906_v38 = vpop.f32.mrf.mxu2 }
0x108e   : > { %v910_v39 = vadd.f32 %v906_v38, %v379_v37 }
0x1090   : > { %1318 = vtanh.f32 %v910_v39  ;;  %v1209_v41 = vmul.f32 -1.442695, %v910_v39 }
0x1092   : > { %1320 = vpow2.f32 %v1209_v41 }
0x1095   : > { %v908_v14 = vpop.f32.mrf.mxu2 }
0x1096   : > { %v1319_v40 = vpop.eup %1318 }
0x1097   : > { %933 = vrot.lane.b32.xlu0 %v1319_v40, %s1351_s30 }
0x1098   : > { %v1321_v42 = vpop.eup %1320 }
0x1099   : > { %v914_v43 = vadd.f32 1.0, %v1321_v42 }
0x109b   : > { %1322 = vrcp.f32 %v914_v43  ;;  %v926_v51 = vand.u32 2147483648, %v914_v43  ;;  %vm920_vm2 = vweird.f32 %v914_v43  ;;  %v924_v9 = vand.u32 2147483647, %v914_v43 }
0x109d   : > { %v927_v11 = vor.u32 1.1754944e-38, %v926_v51  ;;  %vm925_vm4 = vcmp.eq.f32.partialorder %v924_v9, 8.507059e+37 }
0x109f   : > { %523 = vrot.lane.b32.xlu0 %v1507_v21, %s1352_s7  ;;  %v1228_v21 = vld [vmem:[%s1724_s4] sm:$0xff] }
0x10a0   : > { %1005 = vmatpush.bf16.msra.mxu3 %v1228_v21 }
0x10a1   : > { %v1323_v46 = vpop.eup %1322 }
0x10a2   : > { %v916_v47 = vmul.f32 %v1323_v46, %v914_v43  ;;  %vm921_vm13 = vweird.f32 %v1323_v46  ;;  %v1030_v43 = vpop.permute.xlu2 %1029 }
0x10a3   : > { %vm922_vm3 = vmor %vm920_vm2, %vm921_vm13 }
0x10a7   : > { %665 = vrot.lane.b32.xlu0 %v1551_v35, %s1352_s7  ;;  %v917_v35 = vsub.f32 1.0, %v916_v47 }
0x10a9   : > { %v918_v48 = vmul.f32 %v1323_v46, %v917_v35 }
0x10ab   : > { %v919_v50 = vadd.f32 %v1323_v46, %v918_v48 }
0x10ad   : > { %v923_v52 = vsel %vm922_vm3, %v1323_v46, %v919_v50 }
0x10ae   : > { %v928_v55 = vsel %vm925_vm4, %v927_v11, %v923_v52 }
0x10af   : > { %878 = vrot.lane.b32.xlu0 %v876_v28, %s1352_s7  ;;  %v931_v6 = vmul.f32 %v928_v55, %v888_v4 }
0x1109   : > { %v934_v53 = vpop.permute.xlu0 %933 }
0x110a   : > { %v936_v57 = vmul.f32 %v934_v53, %v928_v55 }
0x110c   : > { %938 = vrot.lane.b32.xlu1 %v936_v57, %s1351_s30 }
0x1111   : > { %v524_v58 = vpop.permute.xlu0 %523 }
0x1112   : > { %527 = vst.msk [vmem:[#allocation2 + $0x8] sm:$0xff] %vm397_vm8, %v524_v58 }
0x1119   : > { %v666_v59 = vpop.permute.xlu0 %665  ;;  %v955_v61 = vld [vmem:[#allocation2 + $0x8] sm:$0xff] }
0x111a   : > { %669 = vst.msk [vmem:[#allocation2 + $0x18] sm:$0xff] %vm397_vm8, %v666_v59  ;;  %v962_v62 = vpack.c.bf16 %v955_v61, %v954_v60 }
0x111c   : > { %1218 = vmatmul.msk.bf16.vlgmr.msra.gmra.mxu3 %vm397_vm8, %v962_v62 }
0x1121   : > { %v879_v63 = vpop.permute.xlu0 %878  ;;  %v957_v0 = vld [vmem:[#allocation2 + $0x18] sm:$0xff] }
0x1122   : > { %882 = vst.msk [vmem:[#allocation2 + $0x30] sm:$0xff] %vm397_vm8, %v879_v63  ;;  %v963_v2 = vpack.c.bf16 %v957_v0, %v956_v1 }
0x1129   : > { %v960_v33 = vld [vmem:[#allocation2 + $0x30] sm:$0xff] }
0x112c   : > { %1219 = vmatmul.msk.bf16.gmra.mxu3 %vm397_vm8, %v963_v2 }
0x117e   : > { %v939_v7 = vpop.permute.xlu1 %938 }
0x117f   : > { %v941_v8 = vadd.f32 %v939_v7, %v931_v6 }
0x1181   : > { %1324 = vtanh.f32 %v941_v8 }
0x1187   : > { %v1325_v10 = vpop.eup %1324 }
0x1188   : > { %944 = vrot.lane.b32.xlu1 %v1325_v10, %s1351_s30 }
0x1190   : > { %736 = vrot.lane.b32.xlu1 %v1569_v5, %s1352_s7 }
0x119f   : > { %v1007_v13 = vpop.f32.mrf.mxu3 }
0x11a0   : > { %v1008_v15 = vadd.f32 %v1261_v12, %v1007_v13 }
0x11a2   : > { %v1032_v18 = vsel %vm461_vm7, %v1008_v15, 0.0  ;;  %vm1031_vm7 = vcmp.eq.s32.totalorder %v1030_v43, 1 }
0x11a3   : > { %1040 = vst.msk [vmem:[%s1660_s14] sm:$0xff] %vm335_vm1, %v1032_v18 }
0x11a7   : > { %v1009_v20 = vpop.f32.mrf.mxu3 }
0x11a8   : > { %v1010_v17 = vadd.f32 %v1261_v12, %v1009_v20 }
0x11aa   : > { %v1033_v5 = vsel %vm532_vm14, %v1010_v17, 0.0  ;;  %v1099_v49 = vld [vmem:[%s1660_s14] sm:$0xff] (%p1418_p5) }
0x11ab   : > { %1041 = vst.msk [vmem:[%s1660_s14 + $0x8] sm:$0xff] %vm335_vm1, %v1033_v5 }
0x11ac   : > { %1100 = vst [vmem:[%s1056_s18] sm:$0xff] (%p1418_p5), %v1099_v49 }
0x11af   : > { %v1012_v22 = vpop.f32.mrf.mxu3 }
0x11b0   : > { %v1013_v23 = vadd.f32 %v1261_v12, %v1012_v22 }
0x11b2   : > { %v1034_v45 = vsel %vm603_vm5, %v1013_v23, 0.0  ;;  %v1101_v26 = vld [vmem:[%s1660_s14 + $0x8] sm:$0xff] (%p1418_p5) }
0x11b3   : > { %1042 = vst.msk [vmem:[%s1660_s14 + $0x10] sm:$0xff] %vm335_vm1, %v1034_v45 }
0x11b4   : > { %1102 = vst [vmem:[%s1056_s18 + $0x10] sm:$0xff] (%p1418_p5), %v1101_v26 }
0x11b7   : > { %v1014_v24 = vpop.f32.mrf.mxu3 }
0x11b8   : > { %v1015_v25 = vadd.f32 %v1261_v12, %v1014_v24 }
0x11ba   : > { %v1035_v27 = vsel %vm674_vm15, %v1015_v25, 0.0  ;;  %v1103_v21 = vld [vmem:[%s1660_s14 + $0x10] sm:$0xff] (%p1418_p5) }
0x11bb   : > { %1043 = vst.msk [vmem:[%s1660_s14 + $0x18] sm:$0xff] %vm335_vm1, %v1035_v27 }
0x11bc   : > { %1104 = vst [vmem:[%s1056_s18 + $0x20] sm:$0xff] (%p1418_p5), %v1103_v21 }
0x11c2   : > { %v1105_v47 = vld [vmem:[%s1660_s14 + $0x18] sm:$0xff] (%p1418_p5) }
0x11c3   : > { %1106 = vst [vmem:[%s1056_s18 + $0x30] sm:$0xff] (%p1418_p5), %v1105_v47 }
0x11fa   : > { %v945_v28 = vpop.permute.xlu1 %944 }
0x11fb   : > { %v947_v29 = vmul.f32 %v945_v28, %v928_v55 }
0x11fd   : > { %949 = vrot.lane.b32.xlu1 %v947_v29, %s1352_s7 }
0x1202   : > { %v737_v19 = vpop.permute.xlu1 %736 }
0x1203   : > { %740 = vst.msk [vmem:[#allocation2 + $0x20] sm:$0xff] %vm397_vm8, %v737_v19 }
0x120a   : > { %v958_v30 = vld [vmem:[#allocation2 + $0x20] sm:$0xff] }
0x120b   : > { %v964_v32 = vpack.c.bf16 %v959_v54, %v958_v30 }
0x120d   : > { %1220 = vmatmul.msk.bf16.gmra.mxu3 %vm397_vm8, %v964_v32 }
0x126f   : > { %v950_v31 = vpop.permute.xlu1 %949 }
0x1270   : > { %953 = vst.msk [vmem:[#allocation2 + $0x38] sm:$0xff] %vm397_vm8, %v950_v31 }
0x1277   : > { %v961_v34 = vld [vmem:[#allocation2 + $0x38] sm:$0xff] }
0x1278   : > { %v965_v36 = vpack.c.bf16 %v961_v34, %v960_v33 }
0x127a   : > { %1221 = vmatmul.msk.bf16.gmra.mxu3 %vm397_vm8, %v965_v36 }
0x1290   : > { %v1017_v44 = vpop.f32.mrf.mxu3 }
0x1291   : > { %v1018_v56 = vadd.f32 %v1261_v12, %v1017_v44 }
0x1293   : > { %v1036_v37 = vsel %vm745_vm6, %v1018_v56, 0.0 }
0x1294   : > { %1044 = vst.msk [vmem:[%s1660_s14 + $0x20] sm:$0xff] %vm335_vm1, %v1036_v37 }
0x1298   : > { %v1019_v38 = vpop.f32.mrf.mxu3 }
0x1299   : > { %v1020_v39 = vadd.f32 %v1261_v12, %v1019_v38 }
0x129b   : > { %v1037_v14 = vsel %vm816_vm0, %v1020_v39, 0.0  ;;  %v1107_v35 = vld [vmem:[%s1660_s14 + $0x20] sm:$0xff] (%p1418_p5) }
0x129c   : > { %1045 = vst.msk [vmem:[%s1660_s14 + $0x28] sm:$0xff] %vm335_vm1, %v1037_v14 }
0x129d   : > { %1108 = vst [vmem:[%s1056_s18 + $0x40] sm:$0xff] (%p1418_p5), %v1107_v35 }
0x12a3   : > { %v1109_v48 = vld [vmem:[%s1660_s14 + $0x28] sm:$0xff] (%p1418_p5) }
0x12a4   : > { %1110 = vst [vmem:[%s1056_s18 + $0x50] sm:$0xff] (%p1418_p5), %v1109_v48 }
0x12fd   : > { %v1022_v40 = vpop.f32.mrf.mxu3 }
0x12fe   : > { %v1023_v41 = vadd.f32 %v1261_v12, %v1022_v40 }
0x1300   : > { %v1038_v42 = vsel %vm887_vm11, %v1023_v41, 0.0 }
0x1301   : > { %1046 = vst.msk [vmem:[%s1660_s14 + $0x30] sm:$0xff] %vm335_vm1, %v1038_v42 }
0x1305   : > { %v1024_v3 = vpop.f32.mrf.mxu3  ;;  %1054 = sbr.rel (!%p1418_p5) target bundleno = 4882 (0x1312), region = 86 }
0x1306   : > { %v1025_v16 = vadd.f32 %v1261_v12, %v1024_v3 }
0x1308   : > { %v1039_v46 = vsel %vm1031_vm7, %v1025_v16, 0.0  ;;  %v1111_v50 = vld [vmem:[%s1660_s14 + $0x30] sm:$0xff] (%p1418_p5) }
0x1309   : > { %1047 = vst.msk [vmem:[%s1660_s14 + $0x38] sm:$0xff] %vm335_vm1, %v1039_v46 }
0x130a   : > { %1112 = vst [vmem:[%s1056_s18 + $0x60] sm:$0xff] %v1111_v50 }
0x1310   : > { %v1113_v51 = vld [vmem:[%s1660_s14 + $0x38] sm:$0xff] }
0x1311   : > { %1114 = vst [vmem:[%s1056_s18 + $0x70] sm:$0xff] %v1113_v51 }
0x1312 PF: > { %p13_p10 = scmp.ge.s32.totalorder %s1405_s25, 4   ;;  %s1728_s21 = smov %s1344_s22 }
0x1313   : > { %s1729_s22 = smov %s1416_s28  ;;  %s1730_s23 = smov %s1405_s25 }
0x1314   :  { %15 = sbr.rel (!%p13_p10) target bundleno = 2 (0x2), region = 162 }

</bundles_post_ra>
